<compile_context>
chip_gen: v7x
topology: tpu7x:2x2x1
jax: 0.10.0
libtpu: 0.0.40
codegen_flags: <defaults>
</compile_context>

<pallas_src>
import functools
import math

import jax
import jax.numpy as jnp
from jax import lax
from jax.experimental import pallas as pl
from jax.experimental.pallas import tpu as pltpu


# ----------------------------- in-kernel helpers ---------------------------- #

def _mm(a_f32, w_bf16):
    """a @ w on the MXU: bf16 operands, f32 accumulation."""
    return jnp.dot(a_f32.astype(jnp.bfloat16), w_bf16,
                   preferred_element_type=jnp.float32)


def _layernorm(y, g, b, eps):
    mu = jnp.mean(y, axis=-1, keepdims=True)
    var = jnp.mean(jnp.square(y - mu), axis=-1, keepdims=True)
    return (y - mu) * lax.rsqrt(var + eps) * g + b


def _tile_rows(a, reps):
    """Repeat a [R, C] array `reps` times along rows (sublane concat, cheap)."""
    if reps == 1:
        return a
    return jnp.concatenate([a] * reps, axis=0)


# ------------------------------- fused kernel ------------------------------- #

def _encoder_kernel(init_ref, x_ref,
                    wq_ref, bq_ref, wkv_ref, bkv_ref, wo_ref, bo_ref,
                    ln1g_ref, ln1b_ref, w1_ref, b1_ref, w2_ref, b2_ref,
                    ln2g_ref, ln2b_ref, fcw_ref, fcb_ref,
                    o_ref, h_scr, attn_scr,
                    *, num_heads, head_dim, eps, bblk, L, S):
    """One grid step = one transformer layer applied to a block of Bblk batch rows."""
    D = num_heads * head_dim
    layer = pl.program_id(1)
    last_layer = pl.num_programs(1) - 1

    # ---- layer 0: initialize the carried latent state h from initbottleneck ---- #
    @pl.when(layer == 0)
    def _():
        init = init_ref[...].astype(jnp.float32)              # [L, D]
        h_scr[...] = _tile_rows(init, bblk)                   # [Bblk*L, D]

    h = h_scr[...]                                            # [Bblk*L, D] f32
    x = x_ref[...].reshape(bblk * S, D)                       # [Bblk*S, D] bf16

    # ---- projections on folded batch rows (large MXU M), fused Wkv ---- #
    q = _mm(h, wq_ref[0]) + bq_ref[0]                         # [Bblk*L, D]
    kv = jnp.dot(x, wkv_ref[0],
                 preferred_element_type=jnp.float32) + bkv_ref[0]   # [Bblk*S, 2D]
    k = kv[:, :D]
    v = kv[:, D:]

    q3 = q.reshape(bblk, L, D)
    k3 = k.reshape(bblk, S, D)
    v3 = v.reshape(bblk, S, D)

    # ---- multi-head attention: batched-over-B einsums, heads statically unrolled,
    #      outputs written directly into a lane-dense VMEM scratch ---- #
    scale = 1.0 / math.sqrt(head_dim)
    for i in range(num_heads):
        lo = i * head_dim
        hi = lo + head_dim
        qh = q3[:, :, lo:hi].astype(jnp.bfloat16)             # [Bblk, L, hd]
        kh = k3[:, :, lo:hi].astype(jnp.bfloat16)             # [Bblk, S, hd]
        vh = v3[:, :, lo:hi].astype(jnp.bfloat16)             # [Bblk, S, hd]
        s = jnp.einsum('bld,bsd->bls', qh, kh,
                       preferred_element_type=jnp.float32) * scale   # [Bblk, L, S]
        s = s - jnp.max(s, axis=-1, keepdims=True)
        p = jnp.exp(s)
        denom = jnp.sum(p, axis=-1, keepdims=True)            # [Bblk, L, 1]
        o = jnp.einsum('bls,bsd->bld', p.astype(jnp.bfloat16), vh,
                       preferred_element_type=jnp.float32)    # [Bblk, L, hd]
        # Deferred softmax normalization on the small output (EUP reciprocal).
        o = o * pl.reciprocal(denom, approx=True)
        attn_scr[:, lo:hi] = o.reshape(bblk * L, head_dim)

    attn = _mm(attn_scr[...], wo_ref[0]) + bo_ref[0]          # [Bblk*L, D]

    # ---- post-norm #1 ---- #
    h1 = _layernorm(h + attn, ln1g_ref[0], ln1b_ref[0], eps)

    # ---- feed-forward (intermediate never leaves VMEM / vregs) ---- #
    f = _mm(h1, w1_ref[0]) + b1_ref[0]
    f = jax.nn.gelu(f, approximate=True)
    f = _mm(f, w2_ref[0]) + b2_ref[0]

    # ---- post-norm #2, carry h for the next layer ---- #
    h2 = _layernorm(h1 + f, ln2g_ref[0], ln2b_ref[0], eps)
    h_scr[...] = h2

    # ---- last layer: fused bottleneck FC on (initbottleneck + h) ---- #
    @pl.when(layer == last_layer)
    def _():
        init = init_ref[...].astype(jnp.float32)
        init_t = _tile_rows(init, bblk)                       # [Bblk*L, D]
        y = _mm(init_t + h2, fcw_ref[...]) + fcb_ref[...]     # [Bblk*L, bd]
        o_ref[...] = y.reshape(bblk, L, y.shape[-1]).astype(o_ref.dtype)


# ------------------------------ wrapper / glue ------------------------------ #

def perceiver_encoder(x, params, num_heads, *, bblk=None):
    """x: [B, S, model_dim] -> [B, bottleneck_length, bottleneck_dim]."""
    B, S, D = x.shape
    L = params["initbottleneck"].shape[0]
    bd = params["fc_w"].shape[1]
    num_layers = params["wq"].shape[0]
    F = params["w1"].shape[2]
    head_dim = D // num_heads

    if bblk is None:
        bblk = B                      # fold the whole batch: maximizes MXU M rows
    assert B % bblk == 0, "batch must be divisible by bblk"

    kernel = functools.partial(_encoder_kernel, num_heads=num_heads,
                               head_dim=head_dim, eps=1e-5,
                               bblk=bblk, L=L, S=S)

    const = lambda b, l: (0, 0)                 # shared, fetched once
    per_batch = lambda b, l: (b, 0, 0)          # per batch block, constant over layers
    per_layer = lambda b, l: (l, 0, 0)          # streamed per layer (auto-prefetched)

    return pl.pallas_call(
        kernel,
        out_shape=jax.ShapeDtypeStruct((B, L, bd), jnp.float32),
        grid=(B // bblk, num_layers),
        in_specs=[
            pl.BlockSpec((L, D), const),                  # initbottleneck (f32)
            pl.BlockSpec((bblk, S, D), per_batch),        # x (bf16)
            pl.BlockSpec((1, D, D), per_layer),           # wq   (bf16)
            pl.BlockSpec((1, 1, D), per_layer),           # bq
            pl.BlockSpec((1, D, 2 * D), per_layer),       # wkv  (bf16)
            pl.BlockSpec((1, 1, 2 * D), per_layer),       # bkv
            pl.BlockSpec((1, D, D), per_layer),           # wo   (bf16)
            pl.BlockSpec((1, 1, D), per_layer),           # bo
            pl.BlockSpec((1, 1, D), per_layer),           # ln1_g
            pl.BlockSpec((1, 1, D), per_layer),           # ln1_b
            pl.BlockSpec((1, D, F), per_layer),           # w1   (bf16)
            pl.BlockSpec((1, 1, F), per_layer),           # b1
            pl.BlockSpec((1, F, D), per_layer),           # w2   (bf16)
            pl.BlockSpec((1, 1, D), per_layer),           # b2
            pl.BlockSpec((1, 1, D), per_layer),           # ln2_g
            pl.BlockSpec((1, 1, D), per_layer),           # ln2_b
            pl.BlockSpec((D, bd), const),                 # fc_w (bf16)
            pl.BlockSpec((1, bd), const),                 # fc_b
        ],
        out_specs=pl.BlockSpec((bblk, L, bd), per_batch),
        scratch_shapes=[
            pltpu.VMEM((bblk * L, D), jnp.float32),       # carried latent state h
            pltpu.VMEM((bblk * L, D), jnp.float32),       # per-layer attention output
        ],
        compiler_params=pltpu.CompilerParams(
            dimension_semantics=("parallel", "arbitrary")),
    )(params["initbottleneck"], x.astype(jnp.bfloat16),
      params["wq"], params["bq"], params["wkv"], params["bkv"],
      params["wo"], params["bo"], params["ln1_g"], params["ln1_b"],
      params["w1"], params["b1"], params["w2"], params["b2"],
      params["ln2_g"], params["ln2_b"], params["fc_w"], params["fc_b"])


def init_params(key, bottleneck_length, bottleneck_dim, model_dim, ff_dim, num_layers):
    """Per-layer weights are stacked along a leading layer axis for in-kernel streaming."""
    D, F, L, NL = model_dim, ff_dim, bottleneck_length, num_layers
    ks = jax.random.split(key, 7)

    def dense(k, shape, scale=0.02):
        # Matmul weights stored bf16 (MXU-native; halves weight DMA).
        return (jax.random.normal(k, shape, jnp.float32) * scale).astype(jnp.bfloat16)

    return {
        "initbottleneck": jax.random.normal(ks[0], (L, D), jnp.float32),
        "fc_w": dense(ks[1], (D, bottleneck_dim)),
        "fc_b": jnp.zeros((1, bottleneck_dim), jnp.float32),
        "wq": dense(ks[2], (NL, D, D)),
        "bq": jnp.zeros((NL, 1, D), jnp.float32),
        "wkv": dense(ks[3], (NL, D, 2 * D)),          # fused k/v projection
        "bkv": jnp.zeros((NL, 1, 2 * D), jnp.float32),
        "wo": dense(ks[4], (NL, D, D)),
        "bo": jnp.zeros((NL, 1, D), jnp.float32),
        "ln1_g": jnp.ones((NL, 1, D), jnp.float32),
        "ln1_b": jnp.zeros((NL, 1, D), jnp.float32),
        "w1": dense(ks[5], (NL, D, F)),
        "b1": jnp.zeros((NL, 1, F), jnp.float32),
        "w2": dense(ks[6], (NL, F, D)),
        "b2": jnp.zeros((NL, 1, D), jnp.float32),
        "ln2_g": jnp.ones((NL, 1, D), jnp.float32),
        "ln2_b": jnp.zeros((NL, 1, D), jnp.float32),
    }


if __name__ == "__main__":
    # Small config consistent with the module's forward; dims chosen lane-dense
    # (multiples of 128) per the perf review so every stored last dim is unmasked.
    B, S = 2, 16                 # batch, context (spectrum) sequence length
    model_dim = 128
    num_heads = 4
    num_layers = 2
    ff_dim = 256
    bottleneck_length = 8
    bottleneck_dim = 128

    key = jax.random.PRNGKey(0)
    k_param, k_x = jax.random.split(key)

    params = init_params(k_param, bottleneck_length, bottleneck_dim,
                         model_dim, ff_dim, num_layers)
    x = jax.random.normal(k_x, (B, S, model_dim), jnp.float32)

    fwd = jax.jit(lambda xx, pp: perceiver_encoder(xx, pp, num_heads))
    out = jax.block_until_ready(fwd(x, params))

    assert out.shape == (B, bottleneck_length, bottleneck_dim), out.shape
    assert bool(jnp.all(jnp.isfinite(out)))
    print("KERNEL_OK")
</pallas_src>

<mosaic_0001>
module attributes {stable_mosaic.version = 11 : i64} {
  func.func @_encoder_kernel(%arg0: i32, %arg1: i32, %arg2: memref<8x128xf32, #tpu.memory_space<vmem>>, %arg3: memref<2x16x128xbf16, #tpu.memory_space<vmem>>, %arg4: memref<1x128x128xbf16, #tpu.memory_space<vmem>>, %arg5: memref<1x1x128xf32, #tpu.memory_space<vmem>>, %arg6: memref<1x128x256xbf16, #tpu.memory_space<vmem>>, %arg7: memref<1x1x256xf32, #tpu.memory_space<vmem>>, %arg8: memref<1x128x128xbf16, #tpu.memory_space<vmem>>, %arg9: memref<1x1x128xf32, #tpu.memory_space<vmem>>, %arg10: memref<1x1x128xf32, #tpu.memory_space<vmem>>, %arg11: memref<1x1x128xf32, #tpu.memory_space<vmem>>, %arg12: memref<1x128x256xbf16, #tpu.memory_space<vmem>>, %arg13: memref<1x1x256xf32, #tpu.memory_space<vmem>>, %arg14: memref<1x256x128xbf16, #tpu.memory_space<vmem>>, %arg15: memref<1x1x128xf32, #tpu.memory_space<vmem>>, %arg16: memref<1x1x128xf32, #tpu.memory_space<vmem>>, %arg17: memref<1x1x128xf32, #tpu.memory_space<vmem>>, %arg18: memref<128x128xbf16, #tpu.memory_space<vmem>>, %arg19: memref<1x128xf32, #tpu.memory_space<vmem>>, %arg20: memref<2x8x128xf32, #tpu.memory_space<vmem>>, %arg21: memref<16x128xf32, #tpu.memory_space<vmem>>, %arg22: memref<16x128xf32, #tpu.memory_space<vmem>>) attributes {dimension_semantics = [#tpu.dimension_semantics<parallel>, #tpu.dimension_semantics<arbitrary>], iteration_bounds = array<i64: 1, 2>, scalar_prefetch = 0 : i64, scratch_operands = 2 : i64, tpu.core_type = #tpu.core_type<tc>, window_params = [{pipeline_mode = #tpu.pipeline_mode<synchronous>, transform_indices = @transform_0, window_bounds = array<i64: 8, 128>}, {transform_indices = @transform_1, window_bounds = array<i64: 2, 16, 128>}, {transform_indices = @transform_2, window_bounds = array<i64: 1, 128, 128>}, {transform_indices = @transform_3, window_bounds = array<i64: 1, 1, 128>}, {transform_indices = @transform_4, window_bounds = array<i64: 1, 128, 256>}, {transform_indices = @transform_5, window_bounds = array<i64: 1, 1, 256>}, {transform_indices = @transform_6, window_bounds = array<i64: 1, 128, 128>}, {transform_indices = @transform_7, window_bounds = array<i64: 1, 1, 128>}, {transform_indices = @transform_8, window_bounds = array<i64: 1, 1, 128>}, {transform_indices = @transform_9, window_bounds = array<i64: 1, 1, 128>}, {transform_indices = @transform_10, window_bounds = array<i64: 1, 128, 256>}, {transform_indices = @transform_11, window_bounds = array<i64: 1, 1, 256>}, {transform_indices = @transform_12, window_bounds = array<i64: 1, 256, 128>}, {transform_indices = @transform_13, window_bounds = array<i64: 1, 1, 128>}, {transform_indices = @transform_14, window_bounds = array<i64: 1, 1, 128>}, {transform_indices = @transform_15, window_bounds = array<i64: 1, 1, 128>}, {pipeline_mode = #tpu.pipeline_mode<synchronous>, transform_indices = @transform_16, window_bounds = array<i64: 128, 128>}, {pipeline_mode = #tpu.pipeline_mode<synchronous>, transform_indices = @transform_17, window_bounds = array<i64: 1, 128>}, {transform_indices = @transform_18, window_bounds = array<i64: 2, 8, 128>}]} {
    %c0_i32 = arith.constant 0 : i32
    %0 = arith.cmpi eq, %arg1, %c0_i32 : i32
    %1 = arith.extui %0 : i1 to i32
    %c0_i32_0 = arith.constant 0 : i32
    %2 = arith.cmpi ne, %1, %c0_i32_0 : i32
    scf.if %2 {
      %c0_95 = arith.constant 0 : index
      %c0_96 = arith.constant 0 : index
      %214 = vector.load %arg2[%c0_95, %c0_96] : memref<8x128xf32, #tpu.memory_space<vmem>>, vector<8x128xf32>
      %215 = tpu.concatenate %214, %214 in 0 : vector<8x128xf32>, vector<8x128xf32> -> vector<16x128xf32>
      %c0_97 = arith.constant 0 : index
      %c0_98 = arith.constant 0 : index
      %216 = vector.load %arg21[%c0_97, %c0_98] : memref<16x128xf32, #tpu.memory_space<vmem>>, vector<16x128xf32>
      tpu.vector_store %arg21[%c0_97, %c0_98], %215 {strides = array<i32>} : memref<16x128xf32, #tpu.memory_space<vmem>>, vector<16x128xf32>,
    } else {
    }
    %c0 = arith.constant 0 : index
    %c0_1 = arith.constant 0 : index
    %3 = vector.load %arg21[%c0, %c0_1] : memref<16x128xf32, #tpu.memory_space<vmem>>, vector<16x128xf32>
    %c0_2 = arith.constant 0 : index
    %c0_3 = arith.constant 0 : index
    %c0_4 = arith.constant 0 : index
    %4 = vector.load %arg3[%c0_2, %c0_3, %c0_4] : memref<2x16x128xbf16, #tpu.memory_space<vmem>>, vector<2x16x128xbf16>
    %5 = vector.shape_cast %4 : vector<2x16x128xbf16> to vector<32x128xbf16>
    %c0_5 = arith.constant 0 : index
    %c0_6 = arith.constant 0 : index
    %c0_7 = arith.constant 0 : index
    %6 = vector.load %arg4[%c0_5, %c0_6, %c0_7] : memref<1x128x128xbf16, #tpu.memory_space<vmem>>, vector<1x128x128xbf16>
    %7 = vector.shape_cast %6 : vector<1x128x128xbf16> to vector<128x128xbf16>
    %8 = arith.truncf %3 : vector<16x128xf32> to vector<16x128xbf16>
    %cst = arith.constant dense<0.000000e+00> : vector<16x128xf32>
    %9 = tpu.matmul %8, %7, %cst {dimension_numbers = #tpu.dot_dimension_numbers<[1], [0], [0], [1], [0, 0, 1, 1], [], []>} : vector<16x128xbf16>, vector<128x128xbf16>, vector<16x128xf32> -> vector<16x128xf32>
    %c0_8 = arith.constant 0 : index
    %c0_9 = arith.constant 0 : index
    %c0_10 = arith.constant 0 : index
    %10 = vector.load %arg5[%c0_8, %c0_9, %c0_10] : memref<1x1x128xf32, #tpu.memory_space<vmem>>, vector<1x1x128xf32>
    %11 = vector.shape_cast %10 : vector<1x1x128xf32> to vector<1x128xf32>
    %12 = vector.broadcast %11 : vector<1x128xf32> to vector<16x128xf32>
    %13 = arith.addf %9, %12 : vector<16x128xf32>
    %c0_11 = arith.constant 0 : index
    %c0_12 = arith.constant 0 : index
    %c0_13 = arith.constant 0 : index
    %14 = vector.load %arg6[%c0_11, %c0_12, %c0_13] : memref<1x128x256xbf16, #tpu.memory_space<vmem>>, vector<1x128x256xbf16>
    %15 = vector.shape_cast %14 : vector<1x128x256xbf16> to vector<128x256xbf16>
    %cst_14 = arith.constant dense<0.000000e+00> : vector<32x256xf32>
    %16 = tpu.matmul %5, %15, %cst_14 {dimension_numbers = #tpu.dot_dimension_numbers<[1], [0], [0], [1], [0, 0, 1, 1], [], []>} : vector<32x128xbf16>, vector<128x256xbf16>, vector<32x256xf32> -> vector<32x256xf32>
    %c0_15 = arith.constant 0 : index
    %c0_16 = arith.constant 0 : index
    %c0_17 = arith.constant 0 : index
    %17 = vector.load %arg7[%c0_15, %c0_16, %c0_17] : memref<1x1x256xf32, #tpu.memory_space<vmem>>, vector<1x1x256xf32>
    %18 = vector.shape_cast %17 : vector<1x1x256xf32> to vector<1x256xf32>
    %19 = vector.broadcast %18 : vector<1x256xf32> to vector<32x256xf32>
    %20 = arith.addf %16, %19 : vector<32x256xf32>
    %21 = vector.extract_strided_slice %20 {offsets = [0, 0], sizes = [32, 128], strides = [1, 1]} : vector<32x256xf32> to vector<32x128xf32>
    %22 = vector.extract_strided_slice %20 {offsets = [0, 128], sizes = [32, 128], strides = [1, 1]} : vector<32x256xf32> to vector<32x128xf32>
    %23 = vector.shape_cast %13 : vector<16x128xf32> to vector<2x8x128xf32>
    %24 = vector.shape_cast %21 : vector<32x128xf32> to vector<2x16x128xf32>
    %25 = vector.shape_cast %22 : vector<32x128xf32> to vector<2x16x128xf32>
    %26 = vector.extract_strided_slice %23 {offsets = [0, 0, 0], sizes = [2, 8, 32], strides = [1, 1, 1]} : vector<2x8x128xf32> to vector<2x8x32xf32>
    %27 = arith.truncf %26 : vector<2x8x32xf32> to vector<2x8x32xbf16>
    %28 = vector.extract_strided_slice %24 {offsets = [0, 0, 0], sizes = [2, 16, 32], strides = [1, 1, 1]} : vector<2x16x128xf32> to vector<2x16x32xf32>
    %29 = arith.truncf %28 : vector<2x16x32xf32> to vector<2x16x32xbf16>
    %30 = vector.extract_strided_slice %25 {offsets = [0, 0, 0], sizes = [2, 16, 32], strides = [1, 1, 1]} : vector<2x16x128xf32> to vector<2x16x32xf32>
    %31 = arith.truncf %30 : vector<2x16x32xf32> to vector<2x16x32xbf16>
    "tpu.trace_start"() <{level = 10 : i32, message = "bld,bsd->bls"}> : () -> ()
    %cst_18 = arith.constant dense<0.000000e+00> : vector<2x8x16xf32>
    %32 = tpu.matmul %27, %29, %cst_18 {dimension_numbers = #tpu.dot_dimension_numbers<[2], [2], [1], [1], [0, 0, 0, 1, 1, 1], [0], [0]>} : vector<2x8x32xbf16>, vector<2x16x32xbf16>, vector<2x8x16xf32> -> vector<2x8x16xf32>
    "tpu.trace_stop"() : () -> ()
    %cst_19 = arith.constant 0.176776692 : f32
    %33 = vector.broadcast %cst_19 : f32 to vector<2x8x16xf32>
    %34 = arith.mulf %32, %33 : vector<2x8x16xf32>
    %cst_20 = arith.constant dense<0xFF800000> : vector<2x8xf32>
    %35 = vector.multi_reduction <maximumf>, %34, %cst_20 [2] : vector<2x8x16xf32> to vector<2x8xf32>
    %36 = vector.shape_cast %35 : vector<2x8xf32> to vector<2x8x1xf32>
    %37 = vector.broadcast %36 : vector<2x8x1xf32> to vector<2x8x16xf32>
    %38 = arith.subf %34, %37 : vector<2x8x16xf32>
    %39 = math.exp %38 : vector<2x8x16xf32>
    %cst_21 = arith.constant dense<0.000000e+00> : vector<2x8xf32>
    %40 = vector.multi_reduction <add>, %39, %cst_21 [2] : vector<2x8x16xf32> to vector<2x8xf32>
    %41 = vector.shape_cast %40 : vector<2x8xf32> to vector<2x8x1xf32>
    %42 = arith.truncf %39 : vector<2x8x16xf32> to vector<2x8x16xbf16>
    "tpu.trace_start"() <{level = 10 : i32, message = "bls,bsd->bld"}> : () -> ()
    %cst_22 = arith.constant dense<0.000000e+00> : vector<2x8x32xf32>
    %43 = tpu.matmul %42, %31, %cst_22 {dimension_numbers = #tpu.dot_dimension_numbers<[2], [1], [1], [2], [0, 0, 0, 1, 1, 2], [0], [0]>} : vector<2x8x16xbf16>, vector<2x16x32xbf16>, vector<2x8x32xf32> -> vector<2x8x32xf32>
    "tpu.trace_stop"() : () -> ()
    %44 = tpu.reciprocal %41 {approx = true} : vector<2x8x1xf32> -> vector<2x8x1xf32>
    %45 = vector.broadcast %44 : vector<2x8x1xf32> to vector<2x8x32xf32>
    %46 = arith.mulf %43, %45 : vector<2x8x32xf32>
    %47 = vector.shape_cast %46 : vector<2x8x32xf32> to vector<16x32xf32>
    %c0_23 = arith.constant 0 : index
    %c0_24 = arith.constant 0 : index
    %48 = vector.load %arg22[%c0_23, %c0_24] : memref<16x128xf32, #tpu.memory_space<vmem>>, vector<16x32xf32>
    tpu.vector_store %arg22[%c0_23, %c0_24], %47 {strides = array<i32>} : memref<16x128xf32, #tpu.memory_space<vmem>>, vector<16x32xf32>,
    %49 = vector.extract_strided_slice %23 {offsets = [0, 0, 32], sizes = [2, 8, 32], strides = [1, 1, 1]} : vector<2x8x128xf32> to vector<2x8x32xf32>
    %50 = arith.truncf %49 : vector<2x8x32xf32> to vector<2x8x32xbf16>
    %51 = vector.extract_strided_slice %24 {offsets = [0, 0, 32], sizes = [2, 16, 32], strides = [1, 1, 1]} : vector<2x16x128xf32> to vector<2x16x32xf32>
    %52 = arith.truncf %51 : vector<2x16x32xf32> to vector<2x16x32xbf16>
    %53 = vector.extract_strided_slice %25 {offsets = [0, 0, 32], sizes = [2, 16, 32], strides = [1, 1, 1]} : vector<2x16x128xf32> to vector<2x16x32xf32>
    %54 = arith.truncf %53 : vector<2x16x32xf32> to vector<2x16x32xbf16>
    "tpu.trace_start"() <{level = 10 : i32, message = "bld,bsd->bls"}> : () -> ()
    %cst_25 = arith.constant dense<0.000000e+00> : vector<2x8x16xf32>
    %55 = tpu.matmul %50, %52, %cst_25 {dimension_numbers = #tpu.dot_dimension_numbers<[2], [2], [1], [1], [0, 0, 0, 1, 1, 1], [0], [0]>} : vector<2x8x32xbf16>, vector<2x16x32xbf16>, vector<2x8x16xf32> -> vector<2x8x16xf32>
    "tpu.trace_stop"() : () -> ()
    %cst_26 = arith.constant 0.176776692 : f32
    %56 = vector.broadcast %cst_26 : f32 to vector<2x8x16xf32>
    %57 = arith.mulf %55, %56 : vector<2x8x16xf32>
    %cst_27 = arith.constant dense<0xFF800000> : vector<2x8xf32>
    %58 = vector.multi_reduction <maximumf>, %57, %cst_27 [2] : vector<2x8x16xf32> to vector<2x8xf32>
    %59 = vector.shape_cast %58 : vector<2x8xf32> to vector<2x8x1xf32>
    %60 = vector.broadcast %59 : vector<2x8x1xf32> to vector<2x8x16xf32>
    %61 = arith.subf %57, %60 : vector<2x8x16xf32>
    %62 = math.exp %61 : vector<2x8x16xf32>
    %cst_28 = arith.constant dense<0.000000e+00> : vector<2x8xf32>
    %63 = vector.multi_reduction <add>, %62, %cst_28 [2] : vector<2x8x16xf32> to vector<2x8xf32>
    %64 = vector.shape_cast %63 : vector<2x8xf32> to vector<2x8x1xf32>
    %65 = arith.truncf %62 : vector<2x8x16xf32> to vector<2x8x16xbf16>
    "tpu.trace_start"() <{level = 10 : i32, message = "bls,bsd->bld"}> : () -> ()
    %cst_29 = arith.constant dense<0.000000e+00> : vector<2x8x32xf32>
    %66 = tpu.matmul %65, %54, %cst_29 {dimension_numbers = #tpu.dot_dimension_numbers<[2], [1], [1], [2], [0, 0, 0, 1, 1, 2], [0], [0]>} : vector<2x8x16xbf16>, vector<2x16x32xbf16>, vector<2x8x32xf32> -> vector<2x8x32xf32>
    "tpu.trace_stop"() : () -> ()
    %67 = tpu.reciprocal %64 {approx = true} : vector<2x8x1xf32> -> vector<2x8x1xf32>
    %68 = vector.broadcast %67 : vector<2x8x1xf32> to vector<2x8x32xf32>
    %69 = arith.mulf %66, %68 : vector<2x8x32xf32>
    %70 = vector.shape_cast %69 : vector<2x8x32xf32> to vector<16x32xf32>
    %c0_30 = arith.constant 0 : index
    %c32 = arith.constant 32 : index
    %71 = vector.load %arg22[%c0_30, %c32] : memref<16x128xf32, #tpu.memory_space<vmem>>, vector<16x32xf32>
    tpu.vector_store %arg22[%c0_30, %c32], %70 {strides = array<i32>} : memref<16x128xf32, #tpu.memory_space<vmem>>, vector<16x32xf32>,
    %72 = vector.extract_strided_slice %23 {offsets = [0, 0, 64], sizes = [2, 8, 32], strides = [1, 1, 1]} : vector<2x8x128xf32> to vector<2x8x32xf32>
    %73 = arith.truncf %72 : vector<2x8x32xf32> to vector<2x8x32xbf16>
    %74 = vector.extract_strided_slice %24 {offsets = [0, 0, 64], sizes = [2, 16, 32], strides = [1, 1, 1]} : vector<2x16x128xf32> to vector<2x16x32xf32>
    %75 = arith.truncf %74 : vector<2x16x32xf32> to vector<2x16x32xbf16>
    %76 = vector.extract_strided_slice %25 {offsets = [0, 0, 64], sizes = [2, 16, 32], strides = [1, 1, 1]} : vector<2x16x128xf32> to vector<2x16x32xf32>
    %77 = arith.truncf %76 : vector<2x16x32xf32> to vector<2x16x32xbf16>
    "tpu.trace_start"() <{level = 10 : i32, message = "bld,bsd->bls"}> : () -> ()
    %cst_31 = arith.constant dense<0.000000e+00> : vector<2x8x16xf32>
    %78 = tpu.matmul %73, %75, %cst_31 {dimension_numbers = #tpu.dot_dimension_numbers<[2], [2], [1], [1], [0, 0, 0, 1, 1, 1], [0], [0]>} : vector<2x8x32xbf16>, vector<2x16x32xbf16>, vector<2x8x16xf32> -> vector<2x8x16xf32>
    "tpu.trace_stop"() : () -> ()
    %cst_32 = arith.constant 0.176776692 : f32
    %79 = vector.broadcast %cst_32 : f32 to vector<2x8x16xf32>
    %80 = arith.mulf %78, %79 : vector<2x8x16xf32>
    %cst_33 = arith.constant dense<0xFF800000> : vector<2x8xf32>
    %81 = vector.multi_reduction <maximumf>, %80, %cst_33 [2] : vector<2x8x16xf32> to vector<2x8xf32>
    %82 = vector.shape_cast %81 : vector<2x8xf32> to vector<2x8x1xf32>
    %83 = vector.broadcast %82 : vector<2x8x1xf32> to vector<2x8x16xf32>
    %84 = arith.subf %80, %83 : vector<2x8x16xf32>
    %85 = math.exp %84 : vector<2x8x16xf32>
    %cst_34 = arith.constant dense<0.000000e+00> : vector<2x8xf32>
    %86 = vector.multi_reduction <add>, %85, %cst_34 [2] : vector<2x8x16xf32> to vector<2x8xf32>
    %87 = vector.shape_cast %86 : vector<2x8xf32> to vector<2x8x1xf32>
    %88 = arith.truncf %85 : vector<2x8x16xf32> to vector<2x8x16xbf16>
    "tpu.trace_start"() <{level = 10 : i32, message = "bls,bsd->bld"}> : () -> ()
    %cst_35 = arith.constant dense<0.000000e+00> : vector<2x8x32xf32>
    %89 = tpu.matmul %88, %77, %cst_35 {dimension_numbers = #tpu.dot_dimension_numbers<[2], [1], [1], [2], [0, 0, 0, 1, 1, 2], [0], [0]>} : vector<2x8x16xbf16>, vector<2x16x32xbf16>, vector<2x8x32xf32> -> vector<2x8x32xf32>
    "tpu.trace_stop"() : () -> ()
    %90 = tpu.reciprocal %87 {approx = true} : vector<2x8x1xf32> -> vector<2x8x1xf32>
    %91 = vector.broadcast %90 : vector<2x8x1xf32> to vector<2x8x32xf32>
    %92 = arith.mulf %89, %91 : vector<2x8x32xf32>
    %93 = vector.shape_cast %92 : vector<2x8x32xf32> to vector<16x32xf32>
    %c0_36 = arith.constant 0 : index
    %c64 = arith.constant 64 : index
    %94 = vector.load %arg22[%c0_36, %c64] : memref<16x128xf32, #tpu.memory_space<vmem>>, vector<16x32xf32>
    tpu.vector_store %arg22[%c0_36, %c64], %93 {strides = array<i32>} : memref<16x128xf32, #tpu.memory_space<vmem>>, vector<16x32xf32>,
    %95 = vector.extract_strided_slice %23 {offsets = [0, 0, 96], sizes = [2, 8, 32], strides = [1, 1, 1]} : vector<2x8x128xf32> to vector<2x8x32xf32>
    %96 = arith.truncf %95 : vector<2x8x32xf32> to vector<2x8x32xbf16>
    %97 = vector.extract_strided_slice %24 {offsets = [0, 0, 96], sizes = [2, 16, 32], strides = [1, 1, 1]} : vector<2x16x128xf32> to vector<2x16x32xf32>
    %98 = arith.truncf %97 : vector<2x16x32xf32> to vector<2x16x32xbf16>
    %99 = vector.extract_strided_slice %25 {offsets = [0, 0, 96], sizes = [2, 16, 32], strides = [1, 1, 1]} : vector<2x16x128xf32> to vector<2x16x32xf32>
    %100 = arith.truncf %99 : vector<2x16x32xf32> to vector<2x16x32xbf16>
    "tpu.trace_start"() <{level = 10 : i32, message = "bld,bsd->bls"}> : () -> ()
    %cst_37 = arith.constant dense<0.000000e+00> : vector<2x8x16xf32>
    %101 = tpu.matmul %96, %98, %cst_37 {dimension_numbers = #tpu.dot_dimension_numbers<[2], [2], [1], [1], [0, 0, 0, 1, 1, 1], [0], [0]>} : vector<2x8x32xbf16>, vector<2x16x32xbf16>, vector<2x8x16xf32> -> vector<2x8x16xf32>
    "tpu.trace_stop"() : () -> ()
    %cst_38 = arith.constant 0.176776692 : f32
    %102 = vector.broadcast %cst_38 : f32 to vector<2x8x16xf32>
    %103 = arith.mulf %101, %102 : vector<2x8x16xf32>
    %cst_39 = arith.constant dense<0xFF800000> : vector<2x8xf32>
    %104 = vector.multi_reduction <maximumf>, %103, %cst_39 [2] : vector<2x8x16xf32> to vector<2x8xf32>
    %105 = vector.shape_cast %104 : vector<2x8xf32> to vector<2x8x1xf32>
    %106 = vector.broadcast %105 : vector<2x8x1xf32> to vector<2x8x16xf32>
    %107 = arith.subf %103, %106 : vector<2x8x16xf32>
    %108 = math.exp %107 : vector<2x8x16xf32>
    %cst_40 = arith.constant dense<0.000000e+00> : vector<2x8xf32>
    %109 = vector.multi_reduction <add>, %108, %cst_40 [2] : vector<2x8x16xf32> to vector<2x8xf32>
    %110 = vector.shape_cast %109 : vector<2x8xf32> to vector<2x8x1xf32>
    %111 = arith.truncf %108 : vector<2x8x16xf32> to vector<2x8x16xbf16>
    "tpu.trace_start"() <{level = 10 : i32, message = "bls,bsd->bld"}> : () -> ()
    %cst_41 = arith.constant dense<0.000000e+00> : vector<2x8x32xf32>
    %112 = tpu.matmul %111, %100, %cst_41 {dimension_numbers = #tpu.dot_dimension_numbers<[2], [1], [1], [2], [0, 0, 0, 1, 1, 2], [0], [0]>} : vector<2x8x16xbf16>, vector<2x16x32xbf16>, vector<2x8x32xf32> -> vector<2x8x32xf32>
    "tpu.trace_stop"() : () -> ()
    %113 = tpu.reciprocal %110 {approx = true} : vector<2x8x1xf32> -> vector<2x8x1xf32>
    %114 = vector.broadcast %113 : vector<2x8x1xf32> to vector<2x8x32xf32>
    %115 = arith.mulf %112, %114 : vector<2x8x32xf32>
    %116 = vector.shape_cast %115 : vector<2x8x32xf32> to vector<16x32xf32>
    %c0_42 = arith.constant 0 : index
    %c96 = arith.constant 96 : index
    %117 = vector.load %arg22[%c0_42, %c96] : memref<16x128xf32, #tpu.memory_space<vmem>>, vector<16x32xf32>
    tpu.vector_store %arg22[%c0_42, %c96], %116 {strides = array<i32>} : memref<16x128xf32, #tpu.memory_space<vmem>>, vector<16x32xf32>,
    %c0_43 = arith.constant 0 : index
    %c0_44 = arith.constant 0 : index
    %118 = vector.load %arg22[%c0_43, %c0_44] : memref<16x128xf32, #tpu.memory_space<vmem>>, vector<16x128xf32>
    %c0_45 = arith.constant 0 : index
    %c0_46 = arith.constant 0 : index
    %c0_47 = arith.constant 0 : index
    %119 = vector.load %arg8[%c0_45, %c0_46, %c0_47] : memref<1x128x128xbf16, #tpu.memory_space<vmem>>, vector<1x128x128xbf16>
    %120 = vector.shape_cast %119 : vector<1x128x128xbf16> to vector<128x128xbf16>
    %121 = arith.truncf %118 : vector<16x128xf32> to vector<16x128xbf16>
    %cst_48 = arith.constant dense<0.000000e+00> : vector<16x128xf32>
    %122 = tpu.matmul %121, %120, %cst_48 {dimension_numbers = #tpu.dot_dimension_numbers<[1], [0], [0], [1], [0, 0, 1, 1], [], []>} : vector<16x128xbf16>, vector<128x128xbf16>, vector<16x128xf32> -> vector<16x128xf32>
    %c0_49 = arith.constant 0 : index
    %c0_50 = arith.constant 0 : index
    %c0_51 = arith.constant 0 : index
    %123 = vector.load %arg9[%c0_49, %c0_50, %c0_51] : memref<1x1x128xf32, #tpu.memory_space<vmem>>, vector<1x1x128xf32>
    %124 = vector.shape_cast %123 : vector<1x1x128xf32> to vector<1x128xf32>
    %125 = vector.broadcast %124 : vector<1x128xf32> to vector<16x128xf32>
    %126 = arith.addf %122, %125 : vector<16x128xf32>
    %127 = arith.addf %3, %126 : vector<16x128xf32>
    %c0_52 = arith.constant 0 : index
    %c0_53 = arith.constant 0 : index
    %c0_54 = arith.constant 0 : index
    %128 = vector.load %arg10[%c0_52, %c0_53, %c0_54] : memref<1x1x128xf32, #tpu.memory_space<vmem>>, vector<1x1x128xf32>
    %129 = vector.shape_cast %128 : vector<1x1x128xf32> to vector<1x128xf32>
    %c0_55 = arith.constant 0 : index
    %c0_56 = arith.constant 0 : index
    %c0_57 = arith.constant 0 : index
    %130 = vector.load %arg11[%c0_55, %c0_56, %c0_57] : memref<1x1x128xf32, #tpu.memory_space<vmem>>, vector<1x1x128xf32>
    %131 = vector.shape_cast %130 : vector<1x1x128xf32> to vector<1x128xf32>
    %cst_58 = arith.constant dense<0.000000e+00> : vector<16xf32>
    %132 = vector.multi_reduction <add>, %127, %cst_58 [1] : vector<16x128xf32> to vector<16xf32>
    %133 = vector.shape_cast %132 : vector<16xf32> to vector<16x1xf32>
    %cst_59 = arith.constant 1.280000e+02 : f32
    %134 = vector.broadcast %cst_59 : f32 to vector<16x1xf32>
    %135 = arith.divf %133, %134 : vector<16x1xf32>
    %136 = vector.broadcast %135 : vector<16x1xf32> to vector<16x128xf32>
    %137 = arith.subf %127, %136 : vector<16x128xf32>
    %138 = arith.mulf %137, %137 : vector<16x128xf32>
    %cst_60 = arith.constant dense<0.000000e+00> : vector<16xf32>
    %139 = vector.multi_reduction <add>, %138, %cst_60 [1] : vector<16x128xf32> to vector<16xf32>
    %140 = vector.shape_cast %139 : vector<16xf32> to vector<16x1xf32>
    %cst_61 = arith.constant 1.280000e+02 : f32
    %141 = vector.broadcast %cst_61 : f32 to vector<16x1xf32>
    %142 = arith.divf %140, %141 : vector<16x1xf32>
    %143 = vector.broadcast %135 : vector<16x1xf32> to vector<16x128xf32>
    %144 = arith.subf %127, %143 : vector<16x128xf32>
    %cst_62 = arith.constant 9.99999974E-6 : f32
    %145 = vector.broadcast %cst_62 : f32 to vector<16x1xf32>
    %146 = arith.addf %142, %145 : vector<16x1xf32>
    %147 = math.rsqrt %146 : vector<16x1xf32>
    %148 = vector.broadcast %147 : vector<16x1xf32> to vector<16x128xf32>
    %149 = arith.mulf %144, %148 : vector<16x128xf32>
    %150 = vector.broadcast %129 : vector<1x128xf32> to vector<16x128xf32>
    %151 = arith.mulf %149, %150 : vector<16x128xf32>
    %152 = vector.broadcast %131 : vector<1x128xf32> to vector<16x128xf32>
    %153 = arith.addf %151, %152 : vector<16x128xf32>
    %c0_63 = arith.constant 0 : index
    %c0_64 = arith.constant 0 : index
    %c0_65 = arith.constant 0 : index
    %154 = vector.load %arg12[%c0_63, %c0_64, %c0_65] : memref<1x128x256xbf16, #tpu.memory_space<vmem>>, vector<1x128x256xbf16>
    %155 = vector.shape_cast %154 : vector<1x128x256xbf16> to vector<128x256xbf16>
    %156 = arith.truncf %153 : vector<16x128xf32> to vector<16x128xbf16>
    %cst_66 = arith.constant dense<0.000000e+00> : vector<16x256xf32>
    %157 = tpu.matmul %156, %155, %cst_66 {dimension_numbers = #tpu.dot_dimension_numbers<[1], [0], [0], [1], [0, 0, 1, 1], [], []>} : vector<16x128xbf16>, vector<128x256xbf16>, vector<16x256xf32> -> vector<16x256xf32>
    %c0_67 = arith.constant 0 : index
    %c0_68 = arith.constant 0 : index
    %c0_69 = arith.constant 0 : index
    %158 = vector.load %arg13[%c0_67, %c0_68, %c0_69] : memref<1x1x256xf32, #tpu.memory_space<vmem>>, vector<1x1x256xf32>
    %159 = vector.shape_cast %158 : vector<1x1x256xf32> to vector<1x256xf32>
    %160 = vector.broadcast %159 : vector<1x256xf32> to vector<16x256xf32>
    %161 = arith.addf %157, %160 : vector<16x256xf32>
    %162 = arith.mulf %161, %161 : vector<16x256xf32>
    %163 = arith.mulf %161, %162 : vector<16x256xf32>
    %cst_70 = arith.constant 4.471500e-02 : f32
    %164 = vector.broadcast %cst_70 : f32 to vector<16x256xf32>
    %165 = arith.mulf %164, %163 : vector<16x256xf32>
    %166 = arith.addf %161, %165 : vector<16x256xf32>
    %cst_71 = arith.constant 0.797884583 : f32
    %167 = vector.broadcast %cst_71 : f32 to vector<16x256xf32>
    %168 = arith.mulf %167, %166 : vector<16x256xf32>
    %169 = math.tanh %168 : vector<16x256xf32>
    %cst_72 = arith.constant 1.000000e+00 : f32
    %170 = vector.broadcast %cst_72 : f32 to vector<16x256xf32>
    %171 = arith.addf %170, %169 : vector<16x256xf32>
    %cst_73 = arith.constant 5.000000e-01 : f32
    %172 = vector.broadcast %cst_73 : f32 to vector<16x256xf32>
    %173 = arith.mulf %172, %171 : vector<16x256xf32>
    %174 = arith.mulf %161, %173 : vector<16x256xf32>
    %c0_74 = arith.constant 0 : index
    %c0_75 = arith.constant 0 : index
    %c0_76 = arith.constant 0 : index
    %175 = vector.load %arg14[%c0_74, %c0_75, %c0_76] : memref<1x256x128xbf16, #tpu.memory_space<vmem>>, vector<1x256x128xbf16>
    %176 = vector.shape_cast %175 : vector<1x256x128xbf16> to vector<256x128xbf16>
    %177 = arith.truncf %174 : vector<16x256xf32> to vector<16x256xbf16>
    %cst_77 = arith.constant dense<0.000000e+00> : vector<16x128xf32>
    %178 = tpu.matmul %177, %176, %cst_77 {dimension_numbers = #tpu.dot_dimension_numbers<[1], [0], [0], [1], [0, 0, 1, 1], [], []>} : vector<16x256xbf16>, vector<256x128xbf16>, vector<16x128xf32> -> vector<16x128xf32>
    %c0_78 = arith.constant 0 : index
    %c0_79 = arith.constant 0 : index
    %c0_80 = arith.constant 0 : index
    %179 = vector.load %arg15[%c0_78, %c0_79, %c0_80] : memref<1x1x128xf32, #tpu.memory_space<vmem>>, vector<1x1x128xf32>
    %180 = vector.shape_cast %179 : vector<1x1x128xf32> to vector<1x128xf32>
    %181 = vector.broadcast %180 : vector<1x128xf32> to vector<16x128xf32>
    %182 = arith.addf %178, %181 : vector<16x128xf32>
    %183 = arith.addf %153, %182 : vector<16x128xf32>
    %c0_81 = arith.constant 0 : index
    %c0_82 = arith.constant 0 : index
    %c0_83 = arith.constant 0 : index
    %184 = vector.load %arg16[%c0_81, %c0_82, %c0_83] : memref<1x1x128xf32, #tpu.memory_space<vmem>>, vector<1x1x128xf32>
    %185 = vector.shape_cast %184 : vector<1x1x128xf32> to vector<1x128xf32>
    %c0_84 = arith.constant 0 : index
    %c0_85 = arith.constant 0 : index
    %c0_86 = arith.constant 0 : index
    %186 = vector.load %arg17[%c0_84, %c0_85, %c0_86] : memref<1x1x128xf32, #tpu.memory_space<vmem>>, vector<1x1x128xf32>
    %187 = vector.shape_cast %186 : vector<1x1x128xf32> to vector<1x128xf32>
    %cst_87 = arith.constant dense<0.000000e+00> : vector<16xf32>
    %188 = vector.multi_reduction <add>, %183, %cst_87 [1] : vector<16x128xf32> to vector<16xf32>
    %189 = vector.shape_cast %188 : vector<16xf32> to vector<16x1xf32>
    %cst_88 = arith.constant 1.280000e+02 : f32
    %190 = vector.broadcast %cst_88 : f32 to vector<16x1xf32>
    %191 = arith.divf %189, %190 : vector<16x1xf32>
    %192 = vector.broadcast %191 : vector<16x1xf32> to vector<16x128xf32>
    %193 = arith.subf %183, %192 : vector<16x128xf32>
    %194 = arith.mulf %193, %193 : vector<16x128xf32>
    %cst_89 = arith.constant dense<0.000000e+00> : vector<16xf32>
    %195 = vector.multi_reduction <add>, %194, %cst_89 [1] : vector<16x128xf32> to vector<16xf32>
    %196 = vector.shape_cast %195 : vector<16xf32> to vector<16x1xf32>
    %cst_90 = arith.constant 1.280000e+02 : f32
    %197 = vector.broadcast %cst_90 : f32 to vector<16x1xf32>
    %198 = arith.divf %196, %197 : vector<16x1xf32>
    %199 = vector.broadcast %191 : vector<16x1xf32> to vector<16x128xf32>
    %200 = arith.subf %183, %199 : vector<16x128xf32>
    %cst_91 = arith.constant 9.99999974E-6 : f32
    %201 = vector.broadcast %cst_91 : f32 to vector<16x1xf32>
    %202 = arith.addf %198, %201 : vector<16x1xf32>
    %203 = math.rsqrt %202 : vector<16x1xf32>
    %204 = vector.broadcast %203 : vector<16x1xf32> to vector<16x128xf32>
    %205 = arith.mulf %200, %204 : vector<16x128xf32>
    %206 = vector.broadcast %185 : vector<1x128xf32> to vector<16x128xf32>
    %207 = arith.mulf %205, %206 : vector<16x128xf32>
    %208 = vector.broadcast %187 : vector<1x128xf32> to vector<16x128xf32>
    %209 = arith.addf %207, %208 : vector<16x128xf32>
    %c0_92 = arith.constant 0 : index
    %c0_93 = arith.constant 0 : index
    %210 = vector.load %arg21[%c0_92, %c0_93] : memref<16x128xf32, #tpu.memory_space<vmem>>, vector<16x128xf32>
    tpu.vector_store %arg21[%c0_92, %c0_93], %209 {strides = array<i32>} : memref<16x128xf32, #tpu.memory_space<vmem>>, vector<16x128xf32>,
    %c1_i32 = arith.constant 1 : i32
    %211 = arith.cmpi eq, %arg1, %c1_i32 : i32
    %212 = arith.extui %211 : i1 to i32
    %c0_i32_94 = arith.constant 0 : i32
    %213 = arith.cmpi ne, %212, %c0_i32_94 : i32
    scf.if %213 {
      %c0_95 = arith.constant 0 : index
      %c0_96 = arith.constant 0 : index
      %214 = vector.load %arg2[%c0_95, %c0_96] : memref<8x128xf32, #tpu.memory_space<vmem>>, vector<8x128xf32>
      %215 = tpu.concatenate %214, %214 in 0 : vector<8x128xf32>, vector<8x128xf32> -> vector<16x128xf32>
      %216 = arith.addf %215, %209 : vector<16x128xf32>
      %c0_97 = arith.constant 0 : index
      %c0_98 = arith.constant 0 : index
      %217 = vector.load %arg18[%c0_97, %c0_98] : memref<128x128xbf16, #tpu.memory_space<vmem>>, vector<128x128xbf16>
      %218 = arith.truncf %216 : vector<16x128xf32> to vector<16x128xbf16>
      %cst_99 = arith.constant dense<0.000000e+00> : vector<16x128xf32>
      %219 = tpu.matmul %218, %217, %cst_99 {dimension_numbers = #tpu.dot_dimension_numbers<[1], [0], [0], [1], [0, 0, 1, 1], [], []>} : vector<16x128xbf16>, vector<128x128xbf16>, vector<16x128xf32> -> vector<16x128xf32>
      %c0_100 = arith.constant 0 : index
      %c0_101 = arith.constant 0 : index
      %220 = vector.load %arg19[%c0_100, %c0_101] : memref<1x128xf32, #tpu.memory_space<vmem>>, vector<1x128xf32>
      %221 = vector.broadcast %220 : vector<1x128xf32> to vector<16x128xf32>
      %222 = arith.addf %219, %221 : vector<16x128xf32>
      %223 = vector.shape_cast %222 : vector<16x128xf32> to vector<2x8x128xf32>
      %c0_102 = arith.constant 0 : index
      %c0_103 = arith.constant 0 : index
      %c0_104 = arith.constant 0 : index
      %224 = vector.load %arg20[%c0_102, %c0_103, %c0_104] : memref<2x8x128xf32, #tpu.memory_space<vmem>>, vector<2x8x128xf32>
      tpu.vector_store %arg20[%c0_102, %c0_103, %c0_104], %223 {strides = array<i32>} : memref<2x8x128xf32, #tpu.memory_space<vmem>>, vector<2x8x128xf32>,
    } else {
    }
    return
  }
  func.func @transform_0(%arg0: i32, %arg1: i32) -> (i32, i32) {
    %c0_i32 = arith.constant 0 : i32
    %c0_i32_0 = arith.constant 0 : i32
    %c0_i32_1 = arith.constant 0 : i32
    return %c0_i32, %c0_i32_0 : i32, i32
  }
  func.func @transform_1(%arg0: i32, %arg1: i32) -> (i32, i32, i32) {
    %c0_i32 = arith.constant 0 : i32
    %c0_i32_0 = arith.constant 0 : i32
    %c0_i32_1 = arith.constant 0 : i32
    return %arg0, %c0_i32, %c0_i32_0 : i32, i32, i32
  }
  func.func @transform_2(%arg0: i32, %arg1: i32) -> (i32, i32, i32) {
    %c0_i32 = arith.constant 0 : i32
    %c0_i32_0 = arith.constant 0 : i32
    %c0_i32_1 = arith.constant 0 : i32
    return %arg1, %c0_i32, %c0_i32_0 : i32, i32, i32
  }
  func.func @transform_3(%arg0: i32, %arg1: i32) -> (i32, i32, i32) {
    %c0_i32 = arith.constant 0 : i32
    %c0_i32_0 = arith.constant 0 : i32
    %c0_i32_1 = arith.constant 0 : i32
    return %arg1, %c0_i32, %c0_i32_0 : i32, i32, i32
  }
  func.func @transform_4(%arg0: i32, %arg1: i32) -> (i32, i32, i32) {
    %c0_i32 = arith.constant 0 : i32
    %c0_i32_0 = arith.constant 0 : i32
    %c0_i32_1 = arith.constant 0 : i32
    return %arg1, %c0_i32, %c0_i32_0 : i32, i32, i32
  }
  func.func @transform_5(%arg0: i32, %arg1: i32) -> (i32, i32, i32) {
    %c0_i32 = arith.constant 0 : i32
    %c0_i32_0 = arith.constant 0 : i32
    %c0_i32_1 = arith.constant 0 : i32
    return %arg1, %c0_i32, %c0_i32_0 : i32, i32, i32
  }
  func.func @transform_6(%arg0: i32, %arg1: i32) -> (i32, i32, i32) {
    %c0_i32 = arith.constant 0 : i32
    %c0_i32_0 = arith.constant 0 : i32
    %c0_i32_1 = arith.constant 0 : i32
    return %arg1, %c0_i32, %c0_i32_0 : i32, i32, i32
  }
  func.func @transform_7(%arg0: i32, %arg1: i32) -> (i32, i32, i32) {
    %c0_i32 = arith.constant 0 : i32
    %c0_i32_0 = arith.constant 0 : i32
    %c0_i32_1 = arith.constant 0 : i32
    return %arg1, %c0_i32, %c0_i32_0 : i32, i32, i32
  }
  func.func @transform_8(%arg0: i32, %arg1: i32) -> (i32, i32, i32) {
    %c0_i32 = arith.constant 0 : i32
    %c0_i32_0 = arith.constant 0 : i32
    %c0_i32_1 = arith.constant 0 : i32
    return %arg1, %c0_i32, %c0_i32_0 : i32, i32, i32
  }
  func.func @transform_9(%arg0: i32, %arg1: i32) -> (i32, i32, i32) {
    %c0_i32 = arith.constant 0 : i32
    %c0_i32_0 = arith.constant 0 : i32
    %c0_i32_1 = arith.constant 0 : i32
    return %arg1, %c0_i32, %c0_i32_0 : i32, i32, i32
  }
  func.func @transform_10(%arg0: i32, %arg1: i32) -> (i32, i32, i32) {
    %c0_i32 = arith.constant 0 : i32
    %c0_i32_0 = arith.constant 0 : i32
    %c0_i32_1 = arith.constant 0 : i32
    return %arg1, %c0_i32, %c0_i32_0 : i32, i32, i32
  }
  func.func @transform_11(%arg0: i32, %arg1: i32) -> (i32, i32, i32) {
    %c0_i32 = arith.constant 0 : i32
    %c0_i32_0 = arith.constant 0 : i32
    %c0_i32_1 = arith.constant 0 : i32
    return %arg1, %c0_i32, %c0_i32_0 : i32, i32, i32
  }
  func.func @transform_12(%arg0: i32, %arg1: i32) -> (i32, i32, i32) {
    %c0_i32 = arith.constant 0 : i32
    %c0_i32_0 = arith.constant 0 : i32
    %c0_i32_1 = arith.constant 0 : i32
    return %arg1, %c0_i32, %c0_i32_0 : i32, i32, i32
  }
  func.func @transform_13(%arg0: i32, %arg1: i32) -> (i32, i32, i32) {
    %c0_i32 = arith.constant 0 : i32
    %c0_i32_0 = arith.constant 0 : i32
    %c0_i32_1 = arith.constant 0 : i32
    return %arg1, %c0_i32, %c0_i32_0 : i32, i32, i32
  }
  func.func @transform_14(%arg0: i32, %arg1: i32) -> (i32, i32, i32) {
    %c0_i32 = arith.constant 0 : i32
    %c0_i32_0 = arith.constant 0 : i32
    %c0_i32_1 = arith.constant 0 : i32
    return %arg1, %c0_i32, %c0_i32_0 : i32, i32, i32
  }
  func.func @transform_15(%arg0: i32, %arg1: i32) -> (i32, i32, i32) {
    %c0_i32 = arith.constant 0 : i32
    %c0_i32_0 = arith.constant 0 : i32
    %c0_i32_1 = arith.constant 0 : i32
    return %arg1, %c0_i32, %c0_i32_0 : i32, i32, i32
  }
  func.func @transform_16(%arg0: i32, %arg1: i32) -> (i32, i32) {
    %c0_i32 = arith.constant 0 : i32
    %c0_i32_0 = arith.constant 0 : i32
    %c0_i32_1 = arith.constant 0 : i32
    return %c0_i32, %c0_i32_0 : i32, i32
  }
  func.func @transform_17(%arg0: i32, %arg1: i32) -> (i32, i32) {
    %c0_i32 = arith.constant 0 : i32
    %c0_i32_0 = arith.constant 0 : i32
    %c0_i32_1 = arith.constant 0 : i32
    return %c0_i32, %c0_i32_0 : i32, i32
  }
  func.func @transform_18(%arg0: i32, %arg1: i32) -> (i32, i32, i32) {
    %c0_i32 = arith.constant 0 : i32
    %c0_i32_0 = arith.constant 0 : i32
    %c0_i32_1 = arith.constant 0 : i32
    return %arg0, %c0_i32, %c0_i32_0 : i32, i32, i32
  }
}

</mosaic_0001>

<bundles_post_ra>
// kernel: _lambda_.1
= control target key start
LH: loop header
LB: loop body
LE: loop exit
PB: predicated region body
PF: predicated region fallthrough
CT: control target
= control target key end

     0   :  { %s5267_s0 = inlined_call_operand.vmem [shape: f32[8,128], index: 0, kind: input, shape index: {}]   ;;  %s5268_s1 = inlined_call_operand.vmem [shape: bf16[2,16,128], index: 1, kind: input, shape index: {}]   ;;  %s5269_s2 = inlined_call_operand.hbm [shape: bf16[2,128,128], index: 2, kind: input, shape index: {}]   ;;  %s5270_s3 = inlined_call_operand.vmem [shape: f32[2,1,128], index: 3, kind: input, shape index: {}]   ;;  %s5271_s4 = inlined_call_operand.hbm [shape: bf16[2,128,256], index: 4, kind: input, shape index: {}]   ;;  %s5272_s5 = inlined_call_operand.hbm [shape: f32[2,1,256], index: 5, kind: input, shape index: {}]   ;;  %s5273_s6 = inlined_call_operand.hbm [shape: bf16[2,128,128], index: 6, kind: input, shape index: {}]   ;;  %s5274_s7 = inlined_call_operand.hbm [shape: f32[2,1,128], index: 7, kind: input, shape index: {}]   ;;  %s5275_s8 = inlined_call_operand.vmem [shape: f32[2,1,128], index: 8, kind: input, shape index: {}]   ;;  %s5276_s9 = inlined_call_operand.vmem [shape: f32[2,1,128], index: 9, kind: input, shape index: {}]   ;;  %s5277_s10 = inlined_call_operand.hbm [shape: bf16[2,128,256], index: 10, kind: input, shape index: {}]   ;;  %s5278_s11 = inlined_call_operand.hbm [shape: f32[2,1,256], index: 11, kind: input, shape index: {}]   ;;  %s5279_s12 = inlined_call_operand.hbm [shape: bf16[2,256,128], index: 12, kind: input, shape index: {}]   ;;  %s5280_s13 = inlined_call_operand.hbm [shape: f32[2,1,128], index: 13, kind: input, shape index: {}]   ;;  %s5281_s14 = inlined_call_operand.vmem [shape: f32[2,1,128], index: 14, kind: input, shape index: {}]   ;;  %s5282_s15 = inlined_call_operand.vmem [shape: f32[2,1,128], index: 15, kind: input, shape index: {}]   ;;  %s5283_s16 = inlined_call_operand.vmem [shape: bf16[128,128], index: 16, kind: input, shape index: {}]   ;;  %s5284_s17 = inlined_call_operand.hbm [shape: f32[1,128], index: 17, kind: input, shape index: {}]   ;;  %s5285_s18 = inlined_call_operand.hbm [shape: f32[2,8,128], index: 18, kind: output, shape index: {}]  }
   0x1   :  { %5311 = sst [smem:[#allocation35_spill]] %s5267_s0 }
   0x2   :  { %5312 = sst [smem:[#allocation36_spill]] %s5268_s1 }
   0x3   :  { %5313 = sst [smem:[#allocation37_spill]] %s5269_s2 }
   0x4   :  { %5314 = sst [smem:[#allocation38_spill]] %s5270_s3 }
   0x5   :  { %5315 = sst [smem:[#allocation39_spill]] %s5271_s4 }
   0x6   :  { %5316 = sst [smem:[#allocation40_spill]] %s5272_s5 }
   0x7   :  { %5317 = sst [smem:[#allocation41_spill]] %s5273_s6 }
   0x8   :  { %5318 = sst [smem:[#allocation42_spill]] %s5274_s7 }
   0x9   :  { %5319 = sst [smem:[#allocation43_spill]] %s5275_s8 }
   0xa   :  { %5320 = sst [smem:[#allocation44_spill]] %s5276_s9 }
   0xb   :  { %5321 = sst [smem:[#allocation45_spill]] %s5277_s10 }
   0xc   :  { %5322 = sst [smem:[#allocation46_spill]] %s5278_s11 }
   0xd   :  { %5323 = sst [smem:[#allocation47_spill]] %s5279_s12 }
   0xe   :  { %5324 = sst [smem:[#allocation48_spill]] %s5280_s13 }
   0xf   :  { %5325 = sst [smem:[#allocation49_spill]] %s5281_s14 }
  0x10   :  { %5326 = sst [smem:[#allocation50_spill]] %s5282_s15 }
  0x11   :  { %5327 = sst [smem:[#allocation51_spill]] %s5283_s16 }
  0x12   :  { %5328 = sst [smem:[#allocation52_spill]] %s5284_s17 }
  0x13   :  { %5329 = sst [smem:[#allocation53_spill]] %s5285_s18 }
  0x14   :  { %23 = vsyncpa [#allocation5], 0 }
  0x15   :  { %25 = vsyncpa [#allocation5 + $0x1], 0 }
  0x16   :  { %26 = vsyncpa [#allocation8], 0 }
  0x17   :  { %28 = vsyncpa [#allocation8 + $0x1], 0 }
  0x18   :  { %29 = vsyncpa [#allocation11], 0 }
  0x19   :  { %31 = vsyncpa [#allocation11 + $0x1], 0 }
  0x1a   :  { %32 = vsyncpa [#allocation14], 0 }
  0x1b   :  { %34 = vsyncpa [#allocation14 + $0x1], 0 }
  0x1c   :  { %35 = vsyncpa [#allocation17], 0 }
  0x1d   :  { %37 = vsyncpa [#allocation17 + $0x1], 0 }
  0x1e   :  { %38 = vsyncpa [#allocation20], 0 }
  0x1f   :  { %39 = vsyncpa [#allocation6], 0  ;;  %s4376_s27 = smov 0   ;;  %s4378_s28 = smov 0  }
  0x20   :  { %s4380_s29 = smov 0   ;;  %s4382_s30 = smov 0  }
  0x21   :  { %s4384_s0 = smov 0   ;;  %s4386_s19 = smov 0  }
  0x22 LB: > { %5330 = sst [smem:[#allocation29_spill]] %s4238_s28  ;;  %s54_s1 = sadd.s32 1, %s4250_s0  ;;  %s4254_s19 = sphi %s4386_s19, %s45_s19   ;;  %s4250_s0 = sphi %s4384_s0, %s5393_s0   ;;  %s4246_s30 = sphi %s4382_s30, %s5392_s30   ;;  %s4242_s29 = sphi %s4380_s29, %s5391_s29   ;;  %s4238_s28 = sphi %s4378_s28, %s5390_s28   ;;  %s4234_s27 = sphi %s4376_s27, %s5389_s27  }
  0x23   : > { %5331 = sst [smem:[#allocation30_spill]] %s4242_s29  ;;  %s111_s20 = sadd.s32 1, %s4242_s29 }
  0x24   : > { %5332 = sst [smem:[#allocation31_spill]] %s4246_s30  ;;  %p55_p0 = scmp.ge.s32.totalorder %s54_s1, 2 }
  0x25   : > { %5333 = sst [smem:[#allocation32_spill]] %s4250_s0  ;;  %p118_p1 = scmp.ne.s32.totalorder %s4242_s29, %s4238_s28 }
  0x26   : > { %p119_p2 = scmp.eq.s32.totalorder %s4254_s19, 0  ;;  %s5395_s1 = smov (%p55_p0, %s54_s1), 0 }
  0x27   : > { %5334 = sst [smem:[#allocation33_spill]] %s5395_s1  ;;  %p3650_p4 = scmp.lt.s32.totalorder %s4254_s19, 2 }
  0x28   : > { %p120_p3 = por %p119_p2, %p118_p1  ;;  %s108_s21 = ssub.s32 %s4250_s0, %s5395_s1 }
  0x29   : > { %s4417_s22 = sand.u32 1, %s4242_s29   ;;  %p109_p5 = scmp.eq.s32.totalorder %s108_s21, 0 }
  0x2a   : > { %p4419_p6 = pnand %p3650_p4, %p120_p3  ;;  %s4424_s23 = sand.u32 1, %s4254_s19  }
  0x2b   : > { %s4427_s24 = sshll.u32 %s4417_s22, 7  ;;  %s4433_s26 = sshll.u32 %s4250_s0, 11 }
  0x2c   : > { %s5335_s2 = scalar_select %p4419_p6, 1, 0 }
  0x2d   : > { %s4430_s25 = scalar_select %p109_p5, %s4242_s29, %s111_s20  }
  0x2e   : > { %s5337_s4 = sld [smem:[#allocation39_spill]]  ;;  %s612_s16 = scalar_lea.vmem [#allocation7], %s4427_s24 }
  0x2f   : > { %5336 = sst [smem:[#allocation34_spill]] %s4430_s25  ;;  %s619_s15 = sshll.u32 %s612_s16, 4  ;;  %s4442_s15 = int_to_ptr.vmem [resolvable:$true] %s619_s15 }
  0x30   : > { %s5294_s9 = scalar_lea.sflag [#allocation8], %s4424_s23  ;;  %p4450_p8 = pneg %p4419_p6 }
  0x34   : > { %s4439_s21 = scalar_lea.hbm %s5337_s4, %s4433_s26  ;;  %s3861_s29 = scalar_lea.hbm %s5337_s4, 4096 }
  0x35   : > { %s3856_s20 = scalar_lea.hbm %s4439_s21, 2048  ;;  %p3862_p11 = scmp.lt.u32.totalorder %s4439_s21, %s5337_s4 }
  0x36   : > { %p3857_p7 = scmp.ne.s32.totalorder %s4439_s21, %s3856_s20  ;;  %p3863_p12 = scmp.lt.u32.totalorder %s3861_s29, %s3856_s20 }
  0x37   : > { %p3865_p0 = scmp.lt.u32.totalorder %s3856_s20, %s4439_s21 }
  0x38   : > { %p3859_p9 = pnand %p4450_p8, %p3857_p7  ;;  %p3864_p13 = por %p3863_p12, %p3862_p11 }
  0x3a   : > { %p3860_p10 = pneg %p3859_p9  ;;  %p3866_p1 = por %p3865_p0, %p3864_p13 }
  0x3c   : > { %p3867_p2 = pnand %p3866_p1, %p3860_p10 }
  0x3e   : > { %3870 = shalt.err (!%p3867_p2)
}
  0x3f   : > { %s3871_s14 = scalar_lea.vmem %s4442_s15, 2048  ;;  %s4256_s18 = smov [#allocation7]  }
  0x40   : > { %p3872_p3 = scmp.ne.s32.totalorder %s4442_s15, %s3871_s14  ;;  %s3876_s1 = sshll.u32 %s4256_s18, 4  ;;  %s3877_s1 = int_to_ptr.vmem [resolvable:$false] %s3876_s1 }
  0x41   : > { %s3878_s8 = scalar_lea.vmem %s3877_s1, 4096  ;;  %p3879_p7 = scmp.lt.s32.totalorder %s4442_s15, %s3877_s1 }
  0x42   : > { %p3874_p4 = pnand %p3872_p3, %p4450_p8  ;;  %p3880_p9 = scmp.lt.s32.totalorder %s3878_s8, %s3871_s14 }
  0x44   : > { %p3875_p5 = pneg %p3874_p4  ;;  %p3881_p11 = por %p3880_p9, %p3879_p7 }
  0x46   : > { %p3882_p12 = pnand %p3881_p11, %p3875_p5 }
  0x48   : > { %3885 = shalt.err (!%p3882_p12)
}
  0x49   : > { %s4257_s29 = smov 128   ;;  %s4258_s20 = smov 8  }
  0x4a   : > { %3627 = dma.hbm_to_vmem [thread:$0]  (!%p4419_p6), %s4439_s21, 2048, %s4442_s15, %s5294_s9, %s4257_s29, %s4257_s29, %s4258_s20  }
  0x4b   : > { %s5295_s14 = sshll.u32 %s4250_s0, 10  ;;  %s5339_s6 = sld [smem:[#allocation41_spill]] }
  0x4c   : > { %s5340_s8 = sshll.u32 %s4417_s22, 6  ;;  %s5296_s30 = scalar_lea.sflag [#allocation11], %s4424_s23 }
  0x4d   : > { %s652_s4 = scalar_lea.vmem [#allocation10], %s5340_s8 }
  0x4e   : > { %s659_s3 = sshll.u32 %s652_s4, 4  ;;  %s4488_s3 = int_to_ptr.vmem [resolvable:$true] %s659_s3 }
  0x51   : > { %s4484_s1 = scalar_lea.hbm %s5339_s6, %s5295_s14  ;;  %s3891_s16 = scalar_lea.hbm %s5339_s6, 2048 }
  0x52   : > { %s3886_s13 = scalar_lea.hbm %s4484_s1, 1024  ;;  %p3892_p1 = scmp.lt.u32.totalorder %s4484_s1, %s5339_s6 }
  0x53   : > { %p3887_p10 = scmp.ne.s32.totalorder %s4484_s1, %s3886_s13  ;;  %p3893_p2 = scmp.lt.u32.totalorder %s3891_s16, %s3886_s13 }
  0x54   : > { %p3895_p4 = scmp.lt.u32.totalorder %s3886_s13, %s4484_s1 }
  0x55   : > { %p3889_p13 = pnand %p3887_p10, %p4450_p8  ;;  %p3894_p3 = por %p3893_p2, %p3892_p1 }
  0x57   : > { %p3890_p0 = pneg %p3889_p13  ;;  %p3896_p5 = por %p3895_p4, %p3894_p3 }
  0x59   : > { %p3897_p7 = pnand %p3896_p5, %p3890_p0 }
  0x5b   : > { %3900 = shalt.err (!%p3897_p7)
}
  0x5c   : > { %s3901_s4 = scalar_lea.vmem %s4488_s3, 1024  ;;  %s4259_s8 = smov [#allocation10]  }
  0x5d   : > { %p3902_p9 = scmp.ne.s32.totalorder %s4488_s3, %s3901_s4  ;;  %s3906_s15 = sshll.u32 %s4259_s8, 4  ;;  %s3907_s15 = int_to_ptr.vmem [resolvable:$false] %s3906_s15 }
  0x5e   : > { %s3908_s9 = scalar_lea.vmem %s3907_s15, 2048  ;;  %p3909_p10 = scmp.lt.s32.totalorder %s4488_s3, %s3907_s15 }
  0x5f   : > { %p3904_p11 = pnand %p3902_p9, %p4450_p8  ;;  %p3910_p13 = scmp.lt.s32.totalorder %s3908_s9, %s3901_s4 }
  0x61   : > { %p3905_p12 = pneg %p3904_p11  ;;  %p3911_p1 = por %p3910_p13, %p3909_p10 }
  0x63   : > { %p3912_p2 = pnand %p3911_p1, %p3905_p12 }
  0x65   : > { %3915 = shalt.err (!%p3912_p2)
}
  0x66   : > { %s5299_s13 = smov 64   ;;  %s4261_s21 = smov 4  }
  0x67   : > { %3633 = dma.hbm_to_vmem [thread:$0]  (!%p4419_p6), %s4484_s1, 1024, %s4488_s3, %s5296_s30, %s5299_s13, %s5299_s13, %s4261_s21  }
  0x68   : > { %s5341_s10 = sld [smem:[#allocation45_spill]]  ;;  %s702_s8 = scalar_lea.vmem [#allocation13], %s4427_s24 }
  0x69   : > { %s709_s15 = sshll.u32 %s702_s8, 4  ;;  %s5298_s9 = scalar_lea.sflag [#allocation14], %s4424_s23  ;;  %s4524_s15 = int_to_ptr.vmem [resolvable:$true] %s709_s15 }
  0x6e   : > { %s4521_s4 = scalar_lea.hbm %s5341_s10, %s4433_s26  ;;  %s3921_s16 = scalar_lea.hbm %s5341_s10, 4096 }
  0x6f   : > { %s3916_s14 = scalar_lea.hbm %s4521_s4, 2048  ;;  %p3922_p5 = scmp.lt.u32.totalorder %s4521_s4, %s5341_s10 }
  0x70   : > { %p3917_p0 = scmp.ne.s32.totalorder %s4521_s4, %s3916_s14  ;;  %p3923_p7 = scmp.lt.u32.totalorder %s3921_s16, %s3916_s14 }
  0x71   : > { %p3925_p11 = scmp.lt.u32.totalorder %s3916_s14, %s4521_s4 }
  0x72   : > { %p3919_p3 = pnand %p3917_p0, %p4450_p8  ;;  %p3924_p9 = por %p3923_p7, %p3922_p5 }
  0x74   : > { %p3920_p4 = pneg %p3919_p3  ;;  %p3926_p12 = por %p3925_p11, %p3924_p9 }
  0x76   : > { %p3927_p10 = pnand %p3926_p12, %p3920_p4 }
  0x78   : > { %3930 = shalt.err (!%p3927_p10)
}
  0x79   : > { %s3931_s8 = scalar_lea.vmem %s4524_s15, 2048  ;;  %s4262_s3 = smov [#allocation13]  }
  0x7a   : > { %p3932_p13 = scmp.ne.s32.totalorder %s4524_s15, %s3931_s8  ;;  %s3936_s1 = sshll.u32 %s4262_s3, 4  ;;  %s3937_s1 = int_to_ptr.vmem [resolvable:$false] %s3936_s1 }
  0x7b   : > { %s3938_s30 = scalar_lea.vmem %s3937_s1, 4096  ;;  %p3939_p0 = scmp.lt.s32.totalorder %s4524_s15, %s3937_s1 }
  0x7c   : > { %p3934_p1 = pnand %p3932_p13, %p4450_p8  ;;  %p3940_p3 = scmp.lt.s32.totalorder %s3938_s30, %s3931_s8 }
  0x7e   : > { %p3935_p2 = pneg %p3934_p1  ;;  %p3941_p5 = por %p3940_p3, %p3939_p0 }
  0x80   : > { %p3942_p7 = pnand %p3941_p5, %p3935_p2 }
  0x82   : > { %3945 = shalt.err (!%p3942_p7)
}
  0x83   : > { %3639 = dma.hbm_to_vmem [thread:$0]  (!%p4419_p6), %s4521_s4, 2048, %s4524_s15, %s5298_s9, %s4257_s29, %s4257_s29, %s4258_s20  }
  0x84   : > { %s5342_s12 = sld [smem:[#allocation47_spill]]  ;;  %s742_s8 = scalar_lea.vmem [#allocation16], %s4427_s24 }
  0x85   : > { %s749_s3 = sshll.u32 %s742_s8, 4  ;;  %s5297_s1 = scalar_lea.sflag [#allocation17], %s4424_s23  ;;  %s4560_s3 = int_to_ptr.vmem [resolvable:$true] %s749_s3 }
  0x8a   : > { %s4557_s18 = scalar_lea.hbm %s5342_s12, %s4433_s26  ;;  %s3951_s4 = scalar_lea.hbm %s5342_s12, 4096 }
  0x8b   : > { %s3946_s30 = scalar_lea.hbm %s4557_s18, 2048  ;;  %p3952_p12 = scmp.lt.u32.totalorder %s4557_s18, %s5342_s12 }
  0x8c   : > { %p3947_p4 = scmp.ne.s32.totalorder %s4557_s18, %s3946_s30  ;;  %p3953_p10 = scmp.lt.u32.totalorder %s3951_s4, %s3946_s30 }
  0x8d   : > { %p3955_p1 = scmp.lt.u32.totalorder %s3946_s30, %s4557_s18 }
  0x8e   : > { %p3949_p9 = pnand %p3947_p4, %p4450_p8  ;;  %p3954_p13 = por %p3953_p10, %p3952_p12 }
  0x90   : > { %p3950_p11 = pneg %p3949_p9  ;;  %p3956_p2 = por %p3955_p1, %p3954_p13 }
  0x92   : > { %p3957_p0 = pnand %p3956_p2, %p3950_p11 }
  0x94   : > { %3960 = shalt.err (!%p3957_p0)
}
  0x95   : > { %s3961_s24 = scalar_lea.vmem %s4560_s3, 2048  ;;  %s4263_s14 = smov [#allocation16]  }
  0x96   : > { %p3962_p3 = scmp.ne.s32.totalorder %s4560_s3, %s3961_s24  ;;  %s3966_s16 = sshll.u32 %s4263_s14, 4  ;;  %s3967_s16 = int_to_ptr.vmem [resolvable:$false] %s3966_s16 }
  0x97   : > { %s3968_s8 = scalar_lea.vmem %s3967_s16, 4096  ;;  %p3969_p4 = scmp.lt.s32.totalorder %s4560_s3, %s3967_s16 }
  0x98   : > { %p3964_p5 = pnand %p3962_p3, %p4450_p8  ;;  %p3970_p9 = scmp.lt.s32.totalorder %s3968_s8, %s3961_s24 }
  0x9a   : > { %p3965_p7 = pneg %p3964_p5  ;;  %p3971_p12 = por %p3970_p9, %p3969_p4 }
  0x9c   : > { %p3972_p10 = pnand %p3971_p12, %p3965_p7 }
  0x9e   : > { %3975 = shalt.err (!%p3972_p10)
}
  0x9f   : > { %3645 = dma.hbm_to_vmem [thread:$0]  (!%p4419_p6), %s4557_s18, 2048, %s4560_s3, %s5297_s1, %s5299_s13, %s5299_s13, %s4261_s21  }
  0xa0   : > { %s4590_s30 = sadd.s32 4294967295, %s4254_s19   ;;  %p124_p11 = scmp.ne.s32.totalorder %s4238_s28, %s4234_s27 }
  0xa1   : > { %p5300_p13 = scmp.eq.s32.totalorder %s4590_s30, 0  ;;  %p3207_p1 = scmp.ge.s32.totalorder %s4254_s19, 1 }
  0xa2   : > { %p541_p2 = scmp.lt.s32.totalorder %s4254_s19, 3  ;;  %s4264_s18 = smov [#allocation19]  }
  0xa3   : > { %p4599_p0 = por %p5300_p13, %p124_p11  ;;  %s570_s3 = sshll.u32 %s4264_s18, 4  ;;  %s4607_s3 = int_to_ptr.vmem [resolvable:$true] %s570_s3 }
  0xa4   : > { %p4603_p3 = pnand %p3207_p1, %p541_p2  ;;  %s5345_s27 = sshll.u32 %s4250_s0, 10 }
  0xa5   : > { %s5343_s29 = scalar_select %p4599_p0, 1, 0 }
  0xa6   : > { %s5344_s20 = scalar_select %p4603_p3, 1, 0 }
  0xa7   : > { %p3617_p5 = pneg %p4603_p3  ;;  %s5346_s15 = sld [smem:[#allocation37_spill]] }
  0xa8   : > { %s5347_s14 = sshll.u32 %s4417_s22, 6  ;;  %s582_s1 = scalar_lea.sflag [#allocation5], %s4417_s22 }
  0xa9   : > { %s585_s16 = scalar_lea.vmem [#allocation4], %s5347_s14  ;;  %p4622_p7 = pnand %p3617_p5, %p5300_p13 }
  0xaa   : > { %s592_s8 = sshll.u32 %s585_s16, 4  ;;  %s4626_s8 = int_to_ptr.vmem [resolvable:$true] %s592_s8 }
  0xab   : > { %s5348_s18 = scalar_select %p4622_p7, 1, 0 }
  0xad   : > { %s4616_s24 = scalar_lea.hbm %s5346_s15, %s5345_s27  ;;  %s3981_s26 = scalar_lea.hbm %s5346_s15, 2048 }
  0xae   : > { %s3976_s9 = scalar_lea.hbm %s4616_s24, 1024  ;;  %p3982_p10 = scmp.lt.u32.totalorder %s4616_s24, %s5346_s15 }
  0xaf   : > { %p3977_p4 = scmp.ne.s32.totalorder %s4616_s24, %s3976_s9  ;;  %p3983_p11 = scmp.lt.u32.totalorder %s3981_s26, %s3976_s9 }
  0xb0   : > { %p3985_p2 = scmp.lt.u32.totalorder %s3976_s9, %s4616_s24 }
  0xb1   : > { %p3979_p9 = pnand %p3977_p4, %p4450_p8  ;;  %p3984_p1 = por %p3983_p11, %p3982_p10 }
  0xb3   : > { %p3980_p12 = pneg %p3979_p9  ;;  %p3986_p5 = por %p3985_p2, %p3984_p1 }
  0xb5   : > { %p3987_p13 = pnand %p3986_p5, %p3980_p12 }
  0xb7   : > { %3990 = shalt.err (!%p3987_p13)
}
  0xb8   : > { %s3991_s16 = scalar_lea.vmem %s4626_s8, 1024  ;;  %s4265_s27 = smov [#allocation4]  }
  0xb9   : > { %p3992_p4 = scmp.ne.s32.totalorder %s4626_s8, %s3991_s16  ;;  %s3996_s4 = sshll.u32 %s4265_s27, 4  ;;  %s3997_s4 = int_to_ptr.vmem [resolvable:$false] %s3996_s4 }
  0xba   : > { %s3998_s13 = scalar_lea.vmem %s3997_s4, 2048  ;;  %p3999_p3 = scmp.lt.s32.totalorder %s4626_s8, %s3997_s4 }
  0xbb   : > { %p3994_p9 = pnand %p3992_p4, %p4450_p8  ;;  %p4000_p7 = scmp.lt.s32.totalorder %s3998_s13, %s3991_s16 }
  0xbd   : > { %p3995_p0 = pneg %p3994_p9  ;;  %p4001_p10 = por %p4000_p7, %p3999_p3 }
  0xbf   : > { %p4002_p11 = pnand %p4001_p10, %p3995_p0 }
  0xc1   : > { %4005 = shalt.err (!%p4002_p11)
}
  0xc2   : > { %s5349_s9 = smov 64   ;;  %s5306_s26 = sshll.u32 %s4417_s22, 1 }
  0xc3   : > { %3624 = dma.hbm_to_vmem [thread:$0]  (!%p4419_p6), %s4616_s24, 1024, %s4626_s8, %s582_s1, %s5349_s9, %s5349_s9, %s4261_s21  }
  0xc4   : > { %s5350_s17 = sld [smem:[#allocation52_spill]]  ;;  %p5351_p0 = scmp.ne.s32.totalorder %s5348_s18, 0 }
  0xc6   : > { %p4008_p3 = pneg %p5351_p0 }
  0xca   : > { %s4006_s16 = scalar_lea.hbm %s5350_s17, 16 }
  0xcb   : > { %p4007_p13 = scmp.ne.s32.totalorder %s5350_s17, %s4006_s16  ;;  %p4013_p1 = scmp.lt.u32.totalorder %s4006_s16, %s5350_s17 }
  0xcd   : > { %p4009_p7 = pnand %p4008_p3, %p4007_p13 }
  0xcf   : > { %p4010_p12 = pneg %p4009_p7 }
  0xd1   : > { %p4015_p2 = pnand %p4013_p1, %p4010_p12 }
  0xd3   : > { %4018 = shalt.err (!%p4015_p2)
}
  0xd4   : > { %s4019_s21 = scalar_lea.vmem %s4607_s3, 16  ;;  %s4026_s1 = scalar_lea.vmem %s4607_s3, 32 }
  0xd5   : > { %p4020_p5 = scmp.ne.s32.totalorder %s4607_s3, %s4019_s21  ;;  %p4027_p10 = scmp.lt.s32.totalorder %s4607_s3, %s4607_s3 }
  0xd6   : > { %p4028_p11 = scmp.lt.s32.totalorder %s4026_s1, %s4019_s21 }
  0xd7   : > { %p4022_p4 = pnand %p4020_p5, %p4008_p3 }
  0xd8   : > { %p4029_p13 = por %p4028_p11, %p4027_p10 }
  0xd9   : > { %p4023_p9 = pneg %p4022_p4 }
  0xdb   : > { %p4030_p7 = pnand %p4029_p13, %p4023_p9 }
  0xdd   : > { %4033 = shalt.err (!%p4030_p7)
}
  0xde   : > { %3620 = dma.hbm_to_vmem [thread:$0]  (!%p5351_p0), %s5350_s17, 16, %s4607_s3, [#allocation20]  }
  0xdf   : > { %s3349_s24 = sshll.u32 %s4250_s0, 5  ;;  %s5352_s5 = sld [smem:[#allocation40_spill]] }
  0xe0   : > { %s633_s18 = scalar_lea.vmem [#allocation9], %s5306_s26 }
  0xe1   : > { %s641_s27 = sshll.u32 %s633_s18, 4  ;;  %s642_s27 = int_to_ptr.vmem [resolvable:$true] %s641_s27 }
  0xe5   : > { %s4684_s14 = scalar_lea.hbm %s5352_s5, %s3349_s24  ;;  %s4039_s13 = scalar_lea.hbm %s5352_s5, 64 }
  0xe6   : > { %s4034_s16 = scalar_lea.hbm %s4684_s14, 32  ;;  %p4040_p1 = scmp.lt.u32.totalorder %s4684_s14, %s5352_s5 }
  0xe7   : > { %p4035_p3 = scmp.ne.s32.totalorder %s4684_s14, %s4034_s16  ;;  %p4041_p2 = scmp.lt.u32.totalorder %s4039_s13, %s4034_s16 }
  0xe8   : > { %p4043_p4 = scmp.lt.u32.totalorder %s4034_s16, %s4684_s14 }
  0xe9   : > { %p4037_p12 = pnand %p4035_p3, %p4450_p8  ;;  %p4042_p5 = por %p4041_p2, %p4040_p1 }
  0xeb   : > { %p4038_p0 = pneg %p4037_p12  ;;  %p4044_p9 = por %p4043_p4, %p4042_p5 }
  0xed   : > { %p4045_p10 = pnand %p4044_p9, %p4038_p0 }
  0xef   : > { %4048 = shalt.err (!%p4045_p10)
}
  0xf0   : > { %s4049_s6 = scalar_lea.vmem %s642_s27, 32  ;;  %s4266_s10 = smov [#allocation9]  }
  0xf1   : > { %p4050_p11 = scmp.ne.s32.totalorder %s642_s27, %s4049_s6  ;;  %s4054_s8 = sshll.u32 %s4266_s10, 4  ;;  %s4055_s8 = int_to_ptr.vmem [resolvable:$false] %s4054_s8 }
  0xf2   : > { %s4056_s9 = scalar_lea.vmem %s4055_s8, 64  ;;  %p4057_p3 = scmp.lt.s32.totalorder %s642_s27, %s4055_s8 }
  0xf3   : > { %p4052_p13 = pnand %p4050_p11, %p4450_p8  ;;  %p4058_p12 = scmp.lt.s32.totalorder %s4056_s9, %s4049_s6 }
  0xf5   : > { %p4053_p7 = pneg %p4052_p13  ;;  %p4059_p6 = por %p4058_p12, %p4057_p3 }
  0xf7   : > { %p4060_p1 = pnand %p4059_p6, %p4053_p7 }
  0xf9   : > { %4063 = shalt.err (!%p4060_p1)
}
  0xfa   : > { %p5353_p2 = scmp.ne.s32.totalorder %s5335_s2, 0  ;;  %s5354_s18 = scalar_lea.sflag [#allocation8], %s4424_s23 }
  0xfb   : > { %s3223_s16 = sshll.u32 %s4250_s0, 4  ;;  %s672_s3 = scalar_lea.vmem [#allocation12], %s4417_s22 }
  0xfc   : > { %3630 = dma.hbm_to_vmem [thread:$0]  (!%p5353_p2), %s4684_s14, 32, %s642_s27, %s5354_s18  }
  0xfd   : > { %s679_s4 = sshll.u32 %s672_s3, 4  ;;  %s5355_s7 = sld [smem:[#allocation42_spill]]  ;;  %s680_s4 = int_to_ptr.vmem [resolvable:$true] %s679_s4 }
 0x103   : > { %s677_s1 = scalar_lea.hbm %s5355_s7, %s3223_s16  ;;  %s4069_s9 = scalar_lea.hbm %s5355_s7, 32 }
 0x104   : > { %s4064_s6 = scalar_lea.hbm %s677_s1, 16  ;;  %p4070_p4 = scmp.lt.u32.totalorder %s677_s1, %s5355_s7 }
 0x105   : > { %p4065_p6 = scmp.ne.s32.totalorder %s677_s1, %s4064_s6  ;;  %p4071_p9 = scmp.lt.u32.totalorder %s4069_s9, %s4064_s6 }
 0x106   : > { %p4073_p11 = scmp.lt.u32.totalorder %s4064_s6, %s677_s1 }
 0x107   : > { %p4067_p0 = pnand %p4065_p6, %p4450_p8  ;;  %p4072_p10 = por %p4071_p9, %p4070_p4 }
 0x109   : > { %p4068_p5 = pneg %p4067_p0  ;;  %p4074_p13 = por %p4073_p11, %p4072_p10 }
 0x10b   : > { %p4075_p7 = pnand %p4074_p13, %p4068_p5 }
 0x10d   : > { %4078 = shalt.err (!%p4075_p7)
}
 0x10e   : > { %s4079_s27 = scalar_lea.vmem %s680_s4, 16  ;;  %s4267_s18 = smov [#allocation12]  }
 0x10f   : > { %p4080_p3 = scmp.ne.s32.totalorder %s680_s4, %s4079_s27  ;;  %s4084_s3 = sshll.u32 %s4267_s18, 4  ;;  %s4085_s3 = int_to_ptr.vmem [resolvable:$false] %s4084_s3 }
 0x110   : > { %s4086_s13 = scalar_lea.vmem %s4085_s3, 32  ;;  %p4087_p6 = scmp.lt.s32.totalorder %s680_s4, %s4085_s3 }
 0x111   : > { %p4082_p12 = pnand %p4080_p3, %p4450_p8  ;;  %p4088_p0 = scmp.lt.s32.totalorder %s4086_s13, %s4079_s27 }
 0x113   : > { %p4083_p1 = pneg %p4082_p12  ;;  %p4089_p2 = por %p4088_p0, %p4087_p6 }
 0x115   : > { %p4090_p4 = pnand %p4089_p2, %p4083_p1 }
 0x117   : > { %4093 = shalt.err (!%p4090_p4)
}
 0x118   : > { %p5356_p9 = scmp.ne.s32.totalorder %s5335_s2, 0  ;;  %s5357_s26 = scalar_lea.sflag [#allocation11], %s4424_s23 }
 0x119   : > { %s5358_s11 = sld [smem:[#allocation46_spill]]  ;;  %s5359_s8 = sshll.u32 %s4417_s22, 1 }
 0x11a   : > { %3636 = dma.hbm_to_vmem [thread:$0]  (!%p5356_p9), %s677_s1, 16, %s680_s4, %s5357_s26  }
 0x11b   : > { %s723_s9 = scalar_lea.vmem [#allocation15], %s5359_s8  ;;  %s5360_s3 = sld [smem:[#allocation48_spill]] }
 0x11c   : > { %s731_s14 = sshll.u32 %s723_s9, 4  ;;  %s732_s14 = int_to_ptr.vmem [resolvable:$true] %s731_s14 }
 0x11f   : > { %s4733_s10 = scalar_lea.hbm %s5358_s11, %s3349_s24  ;;  %s4099_s26 = scalar_lea.hbm %s5358_s11, 64 }
 0x120   : > { %s4094_s4 = scalar_lea.hbm %s4733_s10, 32  ;;  %p4100_p11 = scmp.lt.u32.totalorder %s4733_s10, %s5358_s11 }
 0x121   : > { %s4742_s13 = scalar_lea.hbm %s5360_s3, %s3223_s16  ;;  %p4095_p2 = scmp.ne.s32.totalorder %s4733_s10, %s4094_s4 }
 0x122   : > { %p4101_p13 = scmp.lt.u32.totalorder %s4099_s26, %s4094_s4  ;;  %p4103_p3 = scmp.lt.u32.totalorder %s4094_s4, %s4733_s10 }
 0x123   : > { %p4097_p5 = pnand %p4095_p2, %p4450_p8 }
 0x124   : > { %p4102_p7 = por %p4101_p13, %p4100_p11 }
 0x125   : > { %p4098_p10 = pneg %p4097_p5 }
 0x126   : > { %p4104_p12 = por %p4103_p3, %p4102_p7 }
 0x128   : > { %p4105_p1 = pnand %p4104_p12, %p4098_p10 }
 0x12a   : > { %4108 = shalt.err (!%p4105_p1)
}
 0x12b   : > { %s4109_s16 = scalar_lea.vmem %s732_s14, 32  ;;  %s4268_s8 = smov [#allocation15]  }
 0x12c   : > { %p4110_p6 = scmp.ne.s32.totalorder %s732_s14, %s4109_s16  ;;  %s4114_s9 = sshll.u32 %s4268_s8, 4  ;;  %s4115_s9 = int_to_ptr.vmem [resolvable:$false] %s4114_s9 }
 0x12d   : > { %s4116_s27 = scalar_lea.vmem %s4115_s9, 64  ;;  %p4117_p2 = scmp.lt.s32.totalorder %s732_s14, %s4115_s9 }
 0x12e   : > { %p4112_p0 = pnand %p4110_p6, %p4450_p8  ;;  %p4118_p5 = scmp.lt.s32.totalorder %s4116_s27, %s4109_s16 }
 0x130   : > { %p4113_p4 = pneg %p4112_p0  ;;  %p4119_p9 = por %p4118_p5, %p4117_p2 }
 0x132   : > { %p4120_p11 = pnand %p4119_p9, %p4113_p4 }
 0x134   : > { %4123 = shalt.err (!%p4120_p11)
}
 0x135   : > { %p5361_p13 = scmp.ne.s32.totalorder %s5335_s2, 0  ;;  %s5362_s18 = scalar_lea.sflag [#allocation14], %s4424_s23 }
 0x136   : > { %s762_s4 = scalar_lea.vmem [#allocation18], %s4417_s22  ;;  %s4124_s1 = scalar_lea.hbm %s4742_s13, 16 }
 0x137   : > { %3642 = dma.hbm_to_vmem [thread:$0]  (!%p5361_p13), %s4733_s10, 32, %s732_s14, %s5362_s18  }
 0x138   : > { %s769_s24 = sshll.u32 %s762_s4, 4  ;;  %p4125_p10 = scmp.ne.s32.totalorder %s4742_s13, %s4124_s1  ;;  %s770_s24 = int_to_ptr.vmem [resolvable:$true] %s769_s24 }
 0x139   : > { %s4129_s6 = scalar_lea.hbm %s5360_s3, 32  ;;  %p4130_p3 = scmp.lt.u32.totalorder %s4742_s13, %s5360_s3 }
 0x13a   : > { %p4127_p9 = pnand %p4125_p10, %p4450_p8  ;;  %p4131_p12 = scmp.lt.u32.totalorder %s4129_s6, %s4124_s1 }
 0x13b   : > { %p4133_p6 = scmp.lt.u32.totalorder %s4124_s1, %s4742_s13 }
 0x13c   : > { %p4128_p7 = pneg %p4127_p9  ;;  %p4132_p1 = por %p4131_p12, %p4130_p3 }
 0x13e   : > { %p4134_p0 = por %p4133_p6, %p4132_p1 }
 0x140   : > { %p4135_p4 = pnand %p4134_p0, %p4128_p7 }
 0x142   : > { %4138 = shalt.err (!%p4135_p4)
}
 0x143   : > { %s4139_s22 = scalar_lea.vmem %s770_s24, 16  ;;  %s4269_s10 = smov [#allocation18]  }
 0x144   : > { %p4140_p2 = scmp.ne.s32.totalorder %s770_s24, %s4139_s22  ;;  %s4144_s14 = sshll.u32 %s4269_s10, 4  ;;  %s4145_s14 = int_to_ptr.vmem [resolvable:$false] %s4144_s14 }
 0x145   : > { %s4146_s9 = scalar_lea.vmem %s4145_s14, 32  ;;  %p4147_p10 = scmp.lt.s32.totalorder %s770_s24, %s4145_s14 }
 0x146   : > { %p4142_p5 = pnand %p4140_p2, %p4450_p8  ;;  %p4148_p9 = scmp.lt.s32.totalorder %s4146_s9, %s4139_s22 }
 0x148   : > { %p4143_p11 = pneg %p4142_p5  ;;  %p4149_p13 = por %p4148_p9, %p4147_p10 }
 0x14a   : > { %p4150_p3 = pnand %p4149_p13, %p4143_p11 }
 0x14c   : > { %4153 = shalt.err (!%p4150_p3)
}
 0x14d   : > { %p5363_p12 = scmp.ne.s32.totalorder %s5335_s2, 0  ;;  %s5364_s27 = scalar_lea.sflag [#allocation17], %s4424_s23 }
 0x14e   : > { %p5365_p7 = scmp.ne.s32.totalorder %s5344_s20, 0 }
 0x14f   : > { %3648 = dma.hbm_to_vmem [thread:$0]  (!%p5363_p12), %s4742_s13, 16, %s770_s24, %s5364_s27  }
 0x150   : > { %790 = sbr.rel (%p5365_p7) target bundleno = 4065 (0xfe1), region = 92  ;;  %s4786_s25 = sand.u32 (!%p5365_p7), 1, %s4238_s28  }
 0x151   : > { %s3235_s18 = sshll.u32 (!%p5365_p7), %s4786_s25, 6  ;;  %s793_s4 = scalar_lea.sflag (!%p5365_p7), [#allocation5], %s4786_s25 }
 0x152   : > { %s4790_s1 = scalar_lea.vmem (!%p5365_p7), [#allocation4], %s3235_s18  ;;  %p5366_p8 = scmp.ne.s32.totalorder (!%p5365_p7), %s5343_s29, 0 }
 0x157   : > { %4205 = dma.done.wait (%p5366_p8), %s793_s4, 1024  }
 0x158   : > { %4207 = vsyncadd (%p5366_p8), %s793_s4, 4294966272  ;;  %s801_s2 = sand.u32 1, %s4590_s30   ;;  %s3236_s23 = sshll.u32 %s4786_s25, 7 }
 0x159   : > { %s802_s20 = scalar_lea.sflag [#allocation8], %s801_s2  ;;  %s4798_s13 = scalar_lea.vmem [#allocation7], %s3236_s23 }
 0x15a   : > { %4209 = dma.done.wait (%p5366_p8), %s802_s20, 2080  }
 0x15b   : > { %4211 = vsyncadd (%p5366_p8), %s802_s20, 4294965216  ;;  %s3237_s24 = sshll.u32 %s4786_s25, 1  ;;  %s820_s21 = scalar_lea.sflag [#allocation11], %s801_s2 }
 0x15c   : > { %s4805_s26 = scalar_lea.vmem [#allocation9], %s3237_s24  ;;  %s4807_s6 = scalar_lea.vmem [#allocation10], %s3235_s18 }
 0x15d   : > { %4213 = dma.done.wait (%p5366_p8), %s820_s21, 1040  }
 0x15e   : > { %4215 = vsyncadd (%p5366_p8), %s820_s21, 4294966256  ;;  %s837_s8 = scalar_lea.sflag [#allocation14], %s801_s2  ;;  %s4814_s22 = scalar_lea.vmem [#allocation13], %s3236_s23 }
 0x15f   : > { %4217 = dma.done.wait (%p5366_p8), %s837_s8, 2080  }
 0x160   : > { %4219 = vsyncadd (%p5366_p8), %s837_s8, 4294965216  ;;  %s4820_s10 = scalar_lea.vmem [#allocation15], %s3237_s24  ;;  %s855_s14 = scalar_lea.sflag [#allocation17], %s801_s2 }
 0x161   : > { %s4822_s9 = scalar_lea.vmem [#allocation16], %s3236_s23 }
 0x162   : > { %4221 = dma.done.wait (%p5366_p8), %s855_s14, 2064  }
 0x163   : > { %4223 = vsyncadd (%p5366_p8), %s855_s14, 4294965232  ;;  %p5367_p13 = scmp.eq.s32.totalorder %s4590_s30, 0 }
 0x165   : > { %4225 = dma.done.wait (%p5367_p13), [#allocation20], 16   ;;  %p5368_p1 = pmov %p5367_p13 }
 0x166   : > { %s5369_s18 = sld [smem:[#allocation31_spill]]  ;;  %s5372_s3 = sld [smem:[#allocation44_spill]] }
 0x167   : > { %4227 = vsyncadd (%p5368_p1), [#allocation20], 4294967280  ;;  %s5371_s8 = sld [smem:[#allocation43_spill]]  ;;  %s5373_s12 = sld [smem:[#allocation49_spill]] }
 0x168   : > { %s5374_s2 = sld [smem:[#allocation50_spill]] }
 0x16c   : > { %p984_p6 = scmp.lt.s32.totalorder %s5369_s18, 1  ;;  %p3243_p0 = scmp.ne.s32.totalorder %s5369_s18, 0 }
 0x16d   : > { %s5375_s28 = sld [smem:[#allocation35_spill]] (!%p3243_p0) }
 0x16e   : > { %s4835_s4 = scalar_select %p984_p6, %s5369_s18, 1 }
 0x16f   : > { %1004 = sbr.rel (%p3243_p0) target bundleno = 374 (0x176), region = 136 }
 0x170   : > { %s989_s14 = scalar_lea.vmem %s5371_s8, %s4835_s4  ;;  %s992_s5 = scalar_lea.vmem %s5372_s3, %s4835_s4 }
 0x171   : > { %s995_s15 = scalar_lea.vmem %s5373_s12, %s4835_s4  ;;  %s998_s23 = scalar_lea.vmem %s5374_s2, %s4835_s4 }
 0x173   : > { %v1005_v0 = vld [vmem:[%s5375_s28] sm:$0xff] (!%p3243_p0) }
 0x174   : > { %1006 = vst [vmem:[#allocation2] sm:$0xff] (!%p3243_p0), %v1005_v0  ;;  %1007 = vst [vmem:[#allocation2 + $0x8] sm:$0xff] (!%p3243_p0), %v1005_v0 }
 0x176 PF: > { %v3718_v1 = vld [vmem:[%s4798_s13 + $0x4] ss:$8 sps:$4 sm:$0xff]   ;;  %v3720_v2 = vld [vmem:[%s4798_s13] ss:$8 sps:$4 sm:$0xff]   ;;  %v4270_v3 = vmov 0.0   ;;  %v4271_v4 = vmov 0   ;;  %v1145_v32 = vlaneseq }
 0x177   : > { %3435 = vmatprep.subr.bf16.mxu0 %v4270_v3  ;;  %1279 = vmatprep.mubr.bf16.mxu1 %v4271_v4  ;;  %v3721_v5 = vld [vmem:[%s4798_s13 + $0x14] ss:$8 sps:$4 sm:$0xff]   ;;  %v3723_v6 = vld [vmem:[%s4798_s13 + $0x10] ss:$8 sps:$4 sm:$0xff]   ;;  %vm4272_vm0 = vmmov 0   ;;  %v3724_v7 = vld [vmem:[%s4790_s1] sm:$0xff]  }
 0x178   : > { %1247 = vmatprep.subr.bf16.mxu1 %v3718_v1  ;;  %3451 = vmatprep.mubr.msk.bf16.mxu0 %vm4272_vm0, %v4270_v3  ;;  %v3725_v8 = vld [vmem:[%s4798_s13 + $0x24] ss:$8 sps:$4 sm:$0xff]   ;;  %v3727_v10 = vld [vmem:[%s4798_s13 + $0x20] ss:$8 sps:$4 sm:$0xff]   ;;  %v3729_v11 = vld [vmem:[%s4798_s13 + $0x34] ss:$8 sps:$4 sm:$0xff]  }
 0x179   : > { %1248 = vmatpush1.bf16.msra.mxu1 %v3720_v2  ;;  %3436 = vmatpush3.bf16.msra.mxu0 %v3724_v7  ;;  %v3728_v9 = vld [vmem:[%s4790_s1 + $0x8] sm:$0xff]   ;;  %v3732_v12 = vld [vmem:[%s4790_s1 + $0x10] sm:$0xff]   ;;  %v3736_v15 = vld [vmem:[%s4790_s1 + $0x18] sm:$0xff]   ;;  %s5376_s12 = sld [smem:[#allocation36_spill]]  ;;  %v4915_v33 = vshrl.u32 %v1145_v32, 7  ;;  %vm1306_vm1 = vcmask 261120  }
 0x17a   : > { %1249 = vmatprep.subr.bf16.mxu1 %v3721_v5  ;;  %3437 = vmatprep.subr.bf16.mxu0 %v4270_v3  ;;  %v3731_v13 = vld [vmem:[%s4798_s13 + $0x30] ss:$8 sps:$4 sm:$0xff]   ;;  %v3733_v14 = vld [vmem:[%s4798_s13 + $0x44] ss:$8 sps:$4 sm:$0xff]   ;;  %v3735_v16 = vld [vmem:[%s4798_s13 + $0x40] ss:$8 sps:$4 sm:$0xff]  }
 0x17b   : > { %v3737_v17 = vld [vmem:[%s4798_s13 + $0x54] ss:$8 sps:$4 sm:$0xff]   ;;  %v3740_v18 = vld [vmem:[%s4790_s1 + $0x20] sm:$0xff]   ;;  %v3739_v19 = vld [vmem:[%s4798_s13 + $0x50] ss:$8 sps:$4 sm:$0xff]   ;;  %v1147_v34 = vsub.s32 0, %v4915_v33 }
 0x17c   : > { %v3741_v20 = vld [vmem:[%s4798_s13 + $0x64] ss:$8 sps:$4 sm:$0xff]   ;;  %v3743_v21 = vld [vmem:[%s4798_s13 + $0x60] ss:$8 sps:$4 sm:$0xff]   ;;  %v3745_v23 = vld [vmem:[%s4798_s13 + $0x74] ss:$8 sps:$4 sm:$0xff]  }
 0x17d   : > { %1250 = vmatpush1.bf16.msra.mxu1 %v3723_v6  ;;  %3438 = vmatpush3.bf16.msra.mxu0 %v3728_v9  ;;  %v3744_v22 = vld [vmem:[%s4790_s1 + $0x28] sm:$0xff]   ;;  %v3748_v24 = vld [vmem:[%s4790_s1 + $0x30] sm:$0xff]   ;;  %v3750_v26 = vld [vmem:[%s4790_s1 + $0x38] sm:$0xff]   ;;  %v1151_v36 = vsub.s32 1, %v4915_v33  ;;  %s5377_s1 = sld [smem:[#allocation38_spill]]  ;;  %vm1401_vm2 = vcmask 130048  }
 0x17e   : > { %1251 = vmatprep.subr.bf16.mxu1 %v3725_v8  ;;  %3439 = vmatprep.subr.bf16.mxu0 %v4270_v3  ;;  %v3747_v25 = vld [vmem:[%s4798_s13 + $0x70] ss:$8 sps:$4 sm:$0xff]   ;;  %v4895_v27 = vld [vmem:[#allocation2] sm:$0xff]  ;;  %v4897_v28 = vld [vmem:[#allocation2 + $0x8] sm:$0xff]  ;;  %s4274_s16 = smov 64   ;;  %s4275_s27 = smov 32  }
 0x17f   : > { %v3749_v29 = vld [vmem:[%s5376_s12] sm:$0xff]   ;;  %v1030_v30 = vpack.c.bf16 %v4897_v28, %v4895_v27  ;;  %v3751_v31 = vld [vmem:[%s5376_s12 + $0x8] sm:$0xff]   ;;  %vm1746_vm3 = vcmask 523520   ;;  %vm1975_vm4 = vcmask 785920   ;;  %vm2204_vm5 = vcmask 1048320   ;;  %s5385_s7 = sld [smem:[#allocation31_spill]] }
 0x180   : > { %v1143_v35 = vld [vmem:[%s4805_s26] sm:$0x3]  ;;  %s4273_s26 = smov 96  }
 0x181   : > { %1252 = vmatpush1.bf16.msra.mxu1 %v3727_v10  ;;  %3440 = vmatpush3.bf16.msra.mxu0 %v3732_v12  ;;  %v1148_v37 = vrot.slane %v1143_v35, %v1147_v34  ;;  %v1152_v39 = vrot.slane %v1143_v35, %v1151_v36 }
 0x182   : > { %1253 = vmatprep.subr.bf16.mxu1 %v3729_v11  ;;  %3441 = vmatprep.subr.bf16.mxu0 %v4270_v3 }
 0x183   : > { %s5378_s13 = scalar_lea.vmem %s5377_s1, %s4835_s4 }
 0x184   : > { %v3244_v49 = vld [vmem:[%s5378_s13] ss:$0 sm:$0xff] }
 0x185   : > { %1254 = vmatpush1.bf16.msra.mxu1 %v3731_v13  ;;  %3442 = vmatpush3.bf16.msra.mxu0 %v3736_v15  ;;  %p3333_p4 = scmp.ne.s32.totalorder %s5385_s7, 1 }
 0x186   : > { %1255 = vmatprep.subr.bf16.mxu1 %v3733_v14  ;;  %3443 = vmatprep.subr.bf16.mxu0 %v4270_v3  ;;  %vm4277_vm6 = vmmov (!%p3333_p4), 0  }
 0x189   : > { %1256 = vmatpush1.bf16.msra.mxu1 %v3735_v16  ;;  %3444 = vmatpush3.bf16.msra.mxu0 %v3740_v18 }
 0x18a   : > { %1257 = vmatprep.subr.bf16.mxu1 %v3737_v17  ;;  %3445 = vmatprep.subr.bf16.mxu0 %v4270_v3 }
 0x18d   : > { %1258 = vmatpush1.bf16.msra.mxu1 %v3739_v19  ;;  %3446 = vmatpush3.bf16.msra.mxu0 %v3744_v22 }
 0x18e   : > { %1259 = vmatprep.subr.bf16.mxu1 %v3741_v20  ;;  %3447 = vmatprep.subr.bf16.mxu0 %v4270_v3 }
 0x191   : > { %1260 = vmatpush1.bf16.msra.mxu1 %v3743_v21  ;;  %3448 = vmatpush3.bf16.msra.mxu0 %v3748_v24 }
 0x192   : > { %1261 = vmatprep.subr.bf16.mxu1 %v3745_v23  ;;  %3449 = vmatprep.subr.bf16.mxu0 %v4270_v3 }
 0x195   : > { %1262 = vmatpush1.bf16.msra.mxu1 %v3747_v25  ;;  %3450 = vmatpush3.bf16.msra.mxu0 %v3750_v26 }
 0x196   : > { %3479 = vmatprep.subr.bf16.mxu1 %v4270_v3  ;;  %3455 = vmatprep.subr.bf16.mxu0 %v4270_v3 }
 0x198   : > { %1280 = vmatmul.mubr.bf16.vlgmr.msra.gmra.mrb[0].mxu1 %v3749_v29  ;;  %3452 = vmatmul.mubr.bf16.vlgmr.msra.gmra.mrb[0].mxu0 %v1030_v30 }
 0x199   : > { %1289 = vmatprep.mubr.bf16.mxu1 %v4271_v4  ;;  %3457 = vmatprep.mubr.msk.bf16.mxu0 %vm4272_vm0, %v4270_v3 }
 0x1a0   : > { %1290 = vmatmul.mubr.bf16.gmra.mrb[4].mxu1 %v3751_v31 }
 0x1a1   : > { %3481 = vmatprep.mubr.msk.bf16.mxu1 %vm4272_vm0, %v4270_v3 }
 0x26b   : > { %v1281_v38 = vpop.f32.mrb[0].mxu1  ;;  %v1120_v42 = vpop.f32.mrb[0].mxu0 }
 0x26c   : > { %v1283_v40 = vpop.f32.mrb[1].mxu1  ;;  %v1282_v43 = vadd.f32 %v1281_v38, %v1148_v37  ;;  %v3453_v46 = vpop.f32.mrb[1].mxu0  ;;  %v1121_v54 = vadd.f32 %v3244_v49, %v1120_v42 }
 0x26d   : > { %v1285_v41 = vpop.f32.mrb[2].mxu1  ;;  %v1284_v47 = vadd.f32 %v1283_v40, %v1152_v39  ;;  %v1123_v50 = vpop.f32.mrb[2].mxu0 }
 0x26e   : > { %v1286_v44 = vadd.f32 %v1285_v41, %v1148_v37  ;;  %v1287_v45 = vpop.f32.mrb[3].mxu1  ;;  %v3454_v52 = vpop.f32.mrb[3].mxu0  ;;  %v4938_v60 = vpack.c.bf16 %v1121_v54, %v1121_v54  ;;  %v1124_v1 = vadd.f32 %v3244_v49, %v1123_v50 }
 0x26f   : > { %v1288_v48 = vadd.f32 %v1287_v45, %v1152_v39 }
 0x270   : > { %v4929_v51 = vpack.c.bf16 %v1286_v44, %v1282_v43  ;;  %v4952_v7 = vpack.c.bf16 %v1124_v1, %v1124_v1 }
 0x271   : > { %v4931_v53 = vpack.c.bf16 %v1288_v48, %v1284_v47 }
 0x272   : > { %1518 = vrot.lane.b32.xlu1 %v4929_v51, %s4273_s26  ;;  %v1311_v55 = vsel %vm1306_vm1, %v4929_v51, 0 }
 0x273   : > { %v1291_v56 = vpop.f32.mrb[4].mxu1  ;;  %3456 = vmatpush3.bf16.xpose.msra.mxu0 %v1311_v55 }
 0x274   : > { %v1293_v57 = vpop.f32.mrb[5].mxu1  ;;  %3461 = vmatprep.subr.bf16.mxu0 %v4270_v3  ;;  %v1292_v61 = vadd.f32 %v1291_v56, %v1148_v37 }
 0x275   : > { %v1294_v58 = vadd.f32 %v1293_v57, %v1152_v39  ;;  %v1295_v59 = vpop.f32.mrb[6].mxu1 }
 0x276   : > { %v1296_v62 = vadd.f32 %v1295_v59, %v1148_v37  ;;  %v1297_v63 = vpop.f32.mrb[7].mxu1 }
 0x277   : > { %v1298_v0 = vadd.f32 %v1297_v63, %v1152_v39 }
 0x278   : > { %v4940_v2 = vpack.c.bf16 %v1296_v62, %v1292_v61 }
 0x279   : > { %v4942_v5 = vpack.c.bf16 %v1298_v0, %v1294_v58 }
 0x27a   : > { %1570 = vrot.lane.b32.xlu1 %v4940_v2, %s4273_s26  ;;  %3458 = vmatmul.mubr.msk.bf16.vlgmr.msra.gmra.mrb[4].mxu0 %vm1306_vm1, %v4938_v60  ;;  %v1357_v6 = vsel %vm1306_vm1, %v4940_v2, 0 }
 0x27b   : > { %3462 = vmatpush3.bf16.xpose.msra.mxu0 %v1357_v6  ;;  %3463 = vmatprep.mubr.msk.bf16.mxu0 %vm4272_vm0, %v4270_v3 }
 0x27c   : > { %3467 = vmatprep.subr.bf16.mxu0 %v4270_v3 }
 0x27e   : > { %1567 = vrot.lane.b32.xlu1 %v4952_v7, %s4273_s26 }
 0x282   : > { %1641 = vrot.lane.b32.xlu1 %v4931_v53, %s4273_s26  ;;  %3464 = vmatmul.mubr.msk.bf16.vlgmr.msra.gmra.mrb[8].mxu0 %vm1306_vm1, %v4952_v7 }
 0x283   : > { %3468 = vmatpush3.bf16.msra.mxu0 %v4931_v53  ;;  %3469 = vmatprep.mubr.msk.bf16.mxu0 %vm4272_vm0, %v4270_v3 }
 0x284   : > { %3473 = vmatprep.subr.bf16.mxu0 %v4270_v3 }
 0x2e4   : > { %v1519_v8 = vpop.permute.xlu1 %1518 }
 0x2e5   : > { %v1524_v9 = vsel %vm1306_vm1, %v1519_v8, 0 }
 0x2e6   : > { %3480 = vmatpush3.bf16.xpose.msra.mxu1 %v1524_v9 }
 0x2e7   : > { %3491 = vmatprep.subr.bf16.mxu1 %v4270_v3 }
 0x2ec   : > { %v1571_v23 = vpop.permute.xlu1 %1570 }
 0x2ed   : > { %v1576_v41 = vsel %vm1306_vm1, %v1571_v23, 0 }
 0x2f0   : > { %v1568_v26 = vpop.permute.xlu1 %1567 }
 0x2f4   : > { %v1642_v35 = vpop.permute.xlu1 %1641 }
 0x34d   : > { %v1347_v10 = vpop.f32.mrb[4].mxu0 }
 0x34e   : > { %v1399_v11 = vmul.f32 0.17677669, %v1347_v10  ;;  %v3459_v12 = vpop.f32.mrb[5].mxu0 }
 0x34f   : > { %v1350_v13 = vpop.f32.mrb[6].mxu0 }
 0x350   : > { %v3460_v14 = vpop.f32.mrb[7].mxu0  ;;  %v1402_v15 = vsel %vm1401_vm2, %v1399_v11, -inf }
 0x351   : > { %1403 = vmax.xlane.f32.xlu0 %v1402_v15 }
 0x355   : > { %v1393_v16 = vpop.f32.mrb[8].mxu0 }
 0x356   : > { %v1400_v17 = vmul.f32 0.17677669, %v1393_v16  ;;  %v3465_v18 = vpop.f32.mrb[9].mxu0 }
 0x357   : > { %v1396_v19 = vpop.f32.mrb[10].mxu0 }
 0x358   : > { %v3466_v20 = vpop.f32.mrb[11].mxu0  ;;  %v1405_v21 = vsel %vm1401_vm2, %v1400_v17, -inf }
 0x359   : > { %1406 = vmax.xlane.f32.xlu0 %v1405_v21 }
 0x36f   : > { %1515 = vrot.lane.b32.xlu0 %v4938_v60, %s4273_s26 }
 0x3de   : > { %v1404_v22 = vpop.xlane.xlu0 %1403 }
 0x3df   : > { %v1408_v24 = vsub.f32 %v1399_v11, %v1404_v22 }
 0x3e1   : > { %v1410_v25 = vmul.f32 1.442695, %v1408_v24 }
 0x3e3   : > { %3800 = vpow2.f32 %v1410_v25 }
 0x3e6   : > { %v1407_v29 = vpop.xlane.xlu0 %1406 }
 0x3e7   : > { %v1409_v30 = vsub.f32 %v1400_v17, %v1407_v29 }
 0x3e9   : > { %v1412_v31 = vmul.f32 1.442695, %v1409_v30 }
 0x3ea   : > { %v1516_v32 = vpop.permute.xlu0 %1515 }
 0x3eb   : > { %3802 = vpow2.f32 %v1412_v31  ;;  %3482 = vmatmul.mubr.msk.bf16.vlgmr.msra.gmra.mrb[8].mxu1 %vm1306_vm1, %v1516_v32 }
 0x3ec   : > { %3492 = vmatpush3.bf16.msra.mxu1 %v1642_v35  ;;  %3493 = vmatprep.mubr.msk.bf16.mxu1 %vm4272_vm0, %v4270_v3 }
 0x3ed   : > { %v4974_v37 = vpop.eup %3800  ;;  %3503 = vmatprep.subr.bf16.mxu1 %v4270_v3 }
 0x3ee   : > { %v1420_v38 = vpack.c.bf16 %v4974_v37, %v4974_v37 }
 0x3f0   : > { %3470 = vmatmul.mubr.msk.bf16.vlgmr.msra.gmra.mrb[12].mxu0 %vm1401_vm2, %v1420_v38 }
 0x3f1   : > { %3474 = vmatpush3.bf16.msra.mxu0 %v4942_v5  ;;  %3475 = vmatprep.mubr.msk.bf16.mxu0 %vm4272_vm0, %v4270_v3 }
 0x3f2   : > { %3485 = vmatprep.subr.bf16.mxu0 %v4270_v3 }
 0x3f5   : > { %v4984_v39 = vpop.eup %3802 }
 0x3f6   : > { %v1421_v40 = vpack.c.bf16 %v4984_v39, %v4984_v39 }
 0x3f8   : > { %3476 = vmatmul.mubr.msk.bf16.vlgmr.msra.gmra.mrb[16].mxu0 %vm1401_vm2, %v1421_v40 }
 0x3f9   : > { %3487 = vmatprep.mubr.msk.bf16.mxu0 %vm4272_vm0, %v4270_v3 }
 0x3fa   : > { %3486 = vmatpush3.bf16.xpose.msra.mxu0 %v1576_v41 }
 0x3fb   : > { %3497 = vmatprep.subr.bf16.mxu0 %v4270_v3 }
 0x401   : > { %3488 = vmatmul.mubr.msk.bf16.vlgmr.msra.gmra.mrb[20].mxu0 %vm1306_vm1, %v1568_v26 }
 0x402   : > { %3499 = vmatprep.mubr.msk.bf16.mxu0 %vm4272_vm0, %v4270_v3 }
 0x4be   : > { %v1560_v42 = vpop.f32.mrb[8].mxu1 }
 0x4bf   : > { %v1618_v43 = vmul.f32 0.17677669, %v1560_v42  ;;  %v3483_v44 = vpop.f32.mrb[9].mxu1 }
 0x4c0   : > { %v1563_v45 = vpop.f32.mrb[10].mxu1 }
 0x4c1   : > { %v3484_v46 = vpop.f32.mrb[11].mxu1  ;;  %v1620_v47 = vsel %vm1401_vm2, %v1618_v43, -inf }
 0x4c2   : > { %1621 = vmax.xlane.f32.xlu1 %v1620_v47 }
 0x4c3   : > { %v4997_v48 = vpop.f32.mrb[12].mxu0 }
 0x4c4   : > { %v3471_v49 = vpop.f32.mrb[13].mxu0 }
 0x4c5   : > { %v1462_v50 = vpop.f32.mrb[14].mxu0 }
 0x4c6   : > { %v3472_v52 = vpop.f32.mrb[15].mxu0 }
 0x4cb   : > { %v4999_v54 = vpop.f32.mrb[16].mxu0 }
 0x4cc   : > { %v3477_v55 = vpop.f32.mrb[17].mxu0 }
 0x4cd   : > { %v1505_v56 = vpop.f32.mrb[18].mxu0 }
 0x4ce   : > { %v3478_v57 = vpop.f32.mrb[19].mxu0 }
 0x4d3   : > { %1751 = vrot.lane.b32.xlu1 %v4929_v51, %s4274_s16 }
 0x4d4   : > { %v1612_v58 = vpop.f32.mrb[20].mxu0 }
 0x4d5   : > { %v1619_v59 = vmul.f32 0.17677669, %v1612_v58  ;;  %v3489_v61 = vpop.f32.mrb[21].mxu0 }
 0x4d6   : > { %v1615_v62 = vpop.f32.mrb[22].mxu0 }
 0x4d7   : > { %v3490_v63 = vpop.f32.mrb[23].mxu0  ;;  %1801 = vrot.lane.b32.xlu1 %v4940_v2, %s4274_s16  ;;  %v1623_v0 = vsel %vm1401_vm2, %v1619_v59, -inf }
 0x4d8   : > { %1624 = vmax.xlane.f32.xlu0 %v1623_v0 }
 0x4db   : > { %1749 = vrot.lane.b32.xlu1 %v4938_v60, %s4274_s16 }
 0x4df   : > { %1799 = vrot.lane.b32.xlu1 %v4952_v7, %s4274_s16 }
 0x4e3   : > { %1917 = vrot.lane.b32.xlu1 %v4942_v5, %s4274_s16 }
 0x4ee   : > { %1688 = vrot.lane.b32.xlu0 %v4942_v5, %s4273_s26 }
 0x4f2   : > { %1871 = vrot.lane.b32.xlu0 %v4931_v53, %s4274_s16 }
 0x54f   : > { %v1622_v1 = vpop.xlane.xlu1 %1621 }
 0x550   : > { %v1626_v6 = vsub.f32 %v1618_v43, %v1622_v1 }
 0x552   : > { %v1628_v8 = vmul.f32 1.442695, %v1626_v6 }
 0x553   : > { %v1752_v9 = vpop.permute.xlu1 %1751 }
 0x554   : > { %3804 = vpow2.f32 %v1628_v8  ;;  %v1757_v12 = vsel %vm1306_vm1, %v1752_v9, 0 }
 0x557   : > { %v1802_v13 = vpop.permute.xlu1 %1801 }
 0x558   : > { %v1807_v22 = vsel %vm1306_vm1, %v1802_v13, 0 }
 0x55b   : > { %v1750_v16 = vpop.permute.xlu1 %1749 }
 0x55e   : > { %v5016_v10 = vpop.eup %3804 }
 0x55f   : > { %v1638_v11 = vpack.c.bf16 %v5016_v10, %v5016_v10  ;;  %v1800_v23 = vpop.permute.xlu1 %1799 }
 0x561   : > { %3494 = vmatmul.mubr.msk.bf16.vlgmr.msra.gmra.mrb[12].mxu1 %vm1401_vm2, %v1638_v11 }
 0x562   : > { %3504 = vmatpush3.bf16.xpose.msra.mxu1 %v1757_v12  ;;  %3505 = vmatprep.mubr.msk.bf16.mxu1 %vm4272_vm0, %v4270_v3 }
 0x563   : > { %3515 = vmatprep.subr.bf16.mxu1 %v4270_v3  ;;  %v1918_v24 = vpop.permute.xlu1 %1917 }
 0x565   : > { %v1625_v14 = vpop.xlane.xlu0 %1624 }
 0x566   : > { %v1627_v15 = vsub.f32 %v1619_v59, %v1625_v14 }
 0x568   : > { %v1630_v17 = vmul.f32 1.442695, %v1627_v15 }
 0x569   : > { %v1689_v18 = vpop.permute.xlu0 %1688  ;;  %3506 = vmatmul.mubr.msk.bf16.vlgmr.msra.gmra.mrb[16].mxu1 %vm1306_vm1, %v1750_v16 }
 0x56a   : > { %3806 = vpow2.f32 %v1630_v17  ;;  %3498 = vmatpush3.bf16.msra.mxu0 %v1689_v18  ;;  %3517 = vmatprep.mubr.msk.bf16.mxu1 %vm4272_vm0, %v4270_v3 }
 0x56b   : > { %3509 = vmatprep.subr.bf16.mxu0 %v4270_v3 }
 0x56d   : > { %v1872_v19 = vpop.permute.xlu0 %1871 }
 0x56e   : > { %3516 = vmatpush3.bf16.msra.mxu1 %v1872_v19 }
 0x56f   : > { %3527 = vmatprep.subr.bf16.mxu1 %v4270_v3 }
 0x574   : > { %v5030_v20 = vpop.eup %3806 }
 0x575   : > { %v1639_v21 = vpack.c.bf16 %v5030_v20, %v5030_v20 }
 0x577   : > { %3500 = vmatmul.mubr.msk.bf16.vlgmr.msra.gmra.mrb[24].mxu0 %vm1401_vm2, %v1639_v21 }
 0x578   : > { %3510 = vmatpush3.bf16.xpose.msra.mxu0 %v1807_v22  ;;  %3511 = vmatprep.mubr.msk.bf16.mxu0 %vm4272_vm0, %v4270_v3 }
 0x579   : > { %3521 = vmatprep.subr.bf16.mxu0 %v4270_v3 }
 0x57f   : > { %3512 = vmatmul.mubr.msk.bf16.vlgmr.msra.gmra.mrb[28].mxu0 %vm1306_vm1, %v1800_v23 }
 0x580   : > { %3522 = vmatpush3.bf16.msra.mxu0 %v1918_v24  ;;  %3523 = vmatprep.mubr.msk.bf16.mxu0 %vm4272_vm0, %v4270_v3 }
 0x581   : > { %3533 = vmatprep.subr.bf16.mxu0 %v4270_v3 }
 0x634   : > { %v5043_v25 = vpop.f32.mrb[12].mxu1 }
 0x635   : > { %v3495_v26 = vpop.f32.mrb[13].mxu1 }
 0x636   : > { %v1684_v29 = vpop.f32.mrb[14].mxu1 }
 0x637   : > { %v3496_v30 = vpop.f32.mrb[15].mxu1 }
 0x63c   : > { %v1793_v31 = vpop.f32.mrb[16].mxu1 }
 0x63d   : > { %v1849_v32 = vmul.f32 0.17677669, %v1793_v31  ;;  %v3507_v35 = vpop.f32.mrb[17].mxu1 }
 0x63e   : > { %v1796_v38 = vpop.f32.mrb[18].mxu1 }
 0x63f   : > { %v3508_v40 = vpop.f32.mrb[19].mxu1  ;;  %v1851_v41 = vsel %vm1401_vm2, %v1849_v32, -inf }
 0x640   : > { %1852 = vmax.xlane.f32.xlu1 %v1851_v41  ;;  %v1632_v40 = vsel %vm1401_vm2, %v5016_v10, 0.0 }
 0x64a   : > { %v5046_v42 = vpop.f32.mrb[24].mxu0 }
 0x64b   : > { %v3501_v43 = vpop.f32.mrb[25].mxu0 }
 0x64c   : > { %v1731_v44 = vpop.f32.mrb[26].mxu0 }
 0x64d   : > { %v3502_v45 = vpop.f32.mrb[27].mxu0 }
 0x651   : > { %1980 = vrot.lane.b32.xlu1 %v4929_v51, %s4275_s27 }
 0x652   : > { %v1843_v46 = vpop.f32.mrb[28].mxu0 }
 0x653   : > { %v1850_v47 = vmul.f32 0.17677669, %v1843_v46  ;;  %v3513_v49 = vpop.f32.mrb[29].mxu0 }
 0x654   : > { %v1846_v50 = vpop.f32.mrb[30].mxu0  ;;  %v1414_v49 = vsel %vm1401_vm2, %v4974_v37, 0.0  ;;  %v1417_v37 = vsel %vm1401_vm2, %v4984_v39, 0.0 }
 0x655   : > { %v3514_v52 = vpop.f32.mrb[31].mxu0  ;;  %1978 = vrot.lane.b32.xlu1 %v4938_v60, %s4275_s27  ;;  %v1854_v55 = vsel %vm1401_vm2, %v1850_v47, -inf }
 0x656   : > { %1855 = vmax.xlane.f32.xlu0 %v1854_v55 }
 0x66c   : > { %2030 = vrot.lane.b32.xlu0 %v4940_v2, %s4275_s27 }
 0x670   : > { %2028 = vrot.lane.b32.xlu0 %v4952_v7, %s4275_s27 }
 0x6cd   : > { %v1853_v56 = vpop.xlane.xlu1 %1852 }
 0x6ce   : > { %v1857_v57 = vsub.f32 %v1849_v32, %v1853_v56 }
 0x6d0   : > { %v1859_v51 = vmul.f32 1.442695, %v1857_v57 }
 0x6d1   : > { %v1981_v59 = vpop.permute.xlu1 %1980 }
 0x6d2   : > { %3808 = vpow2.f32 %v1859_v51  ;;  %v1986_v62 = vsel %vm1306_vm1, %v1981_v59, 0 }
 0x6d5   : > { %v1979_v7 = vpop.permute.xlu1 %1978 }
 0x6dc   : > { %v3809_v58 = vpop.eup %3808 }
 0x6dd   : > { %v1869_v61 = vpack.c.bf16 %v3809_v58, %v3809_v58  ;;  %v1863_v43 = vsel %vm1401_vm2, %v3809_v58, 0.0 }
 0x6df   : > { %3518 = vmatmul.mubr.msk.bf16.vlgmr.msra.gmra.mrb[20].mxu1 %vm1401_vm2, %v1869_v61 }
 0x6e0   : > { %3528 = vmatpush3.bf16.xpose.msra.mxu1 %v1986_v62  ;;  %3529 = vmatprep.mubr.msk.bf16.mxu1 %vm4272_vm0, %v4270_v3 }
 0x6e1   : > { %3539 = vmatprep.subr.bf16.mxu1 %v4270_v3 }
 0x6e3   : > { %v1856_v60 = vpop.xlane.xlu0 %1855 }
 0x6e4   : > { %v1858_v2 = vsub.f32 %v1850_v47, %v1856_v60 }
 0x6e6   : > { %v1861_v63 = vmul.f32 1.442695, %v1858_v2 }
 0x6e7   : > { %3530 = vmatmul.mubr.msk.bf16.vlgmr.msra.gmra.mrb[24].mxu1 %vm1306_vm1, %v1979_v7  ;;  %v2031_v1 = vpop.permute.xlu0 %2030 }
 0x6e8   : > { %3810 = vpow2.f32 %v1861_v63  ;;  %3541 = vmatprep.mubr.msk.bf16.mxu1 %vm4272_vm0, %v4270_v3  ;;  %v2036_v8 = vsel %vm1306_vm1, %v2031_v1, 0 }
 0x6eb   : > { %v2029_v9 = vpop.permute.xlu0 %2028 }
 0x6f2   : > { %v3811_v0 = vpop.eup %3810 }
 0x6f3   : > { %v1870_v6 = vpack.c.bf16 %v3811_v0, %v3811_v0  ;;  %v1866_v41 = vsel %vm1401_vm2, %v3811_v0, 0.0 }
 0x6f5   : > { %3524 = vmatmul.mubr.msk.bf16.vlgmr.msra.gmra.mrb[32].mxu0 %vm1401_vm2, %v1870_v6  ;;  %v3752_v6 = vld [vmem:[%s4807_s6] sm:$0xff]  }
 0x6f6   : > { %3534 = vmatpush3.bf16.xpose.msra.mxu0 %v2036_v8  ;;  %3535 = vmatprep.mubr.msk.bf16.mxu0 %vm4272_vm0, %v4270_v3  ;;  %v3753_v8 = vld [vmem:[%s4807_s6 + $0x8] sm:$0xff]  }
 0x6f7   : > { %3545 = vmatprep.subr.bf16.mxu0 %v4270_v3 }
 0x6fd   : > { %3536 = vmatmul.mubr.msk.bf16.vlgmr.msra.gmra.mrb[36].mxu0 %vm1306_vm1, %v2029_v9  ;;  %v3754_v9 = vld [vmem:[%s4807_s6 + $0x10] sm:$0xff]  }
 0x6fe   : > { %3547 = vmatprep.mubr.msk.bf16.mxu0 %vm4272_vm0, %v4270_v3 }
 0x7b2   : > { %v5073_v11 = vpop.f32.mrb[20].mxu1 }
 0x7b3   : > { %v3519_v12 = vpop.f32.mrb[21].mxu1 }
 0x7b4   : > { %v1914_v13 = vpop.f32.mrb[22].mxu1 }
 0x7b5   : > { %v3520_v14 = vpop.f32.mrb[23].mxu1 }
 0x7ba   : > { %v2022_v15 = vpop.f32.mrb[24].mxu1 }
 0x7bb   : > { %v2078_v16 = vmul.f32 0.17677669, %v2022_v15  ;;  %v3531_v17 = vpop.f32.mrb[25].mxu1 }
 0x7bc   : > { %v2025_v18 = vpop.f32.mrb[26].mxu1 }
 0x7bd   : > { %v3532_v19 = vpop.f32.mrb[27].mxu1  ;;  %v2080_v21 = vsel %vm1401_vm2, %v2078_v16, -inf }
 0x7be   : > { %2081 = vmax.xlane.f32.xlu1 %v2080_v21 }
 0x7c8   : > { %v1957_v22 = vpop.f32.mrb[32].mxu0 }
 0x7c9   : > { %v3525_v23 = vpop.f32.mrb[33].mxu0 }
 0x7ca   : > { %v1960_v24 = vpop.f32.mrb[34].mxu0  ;;  %v3756_v23 = vld [vmem:[%s4807_s6 + $0x20] sm:$0xff]  }
 0x7cb   : > { %v3526_v26 = vpop.f32.mrb[35].mxu0  ;;  %v3757_v24 = vld [vmem:[%s4807_s6 + $0x28] sm:$0xff]  }
 0x7cf   : > { %2146 = vrot.lane.b32.xlu1 %v4942_v5, %s4275_s27  ;;  %v1635_v5 = vsel %vm1401_vm2, %v5030_v20, 0.0 }
 0x7d0   : > { %v2072_v29 = vpop.f32.mrb[36].mxu0 }
 0x7d1   : > { %v2079_v30 = vmul.f32 0.17677669, %v2072_v29  ;;  %v3537_v31 = vpop.f32.mrb[37].mxu0  ;;  %v3758_v29 = vld [vmem:[%s4807_s6 + $0x30] sm:$0xff]  }
 0x7d2   : > { %v2075_v32 = vpop.f32.mrb[38].mxu0 }
 0x7d3   : > { %v3538_v35 = vpop.f32.mrb[39].mxu0  ;;  %v2083_v38 = vsel %vm1401_vm2, %v2079_v30, -inf }
 0x7d4   : > { %2084 = vmax.xlane.f32.xlu0 %v2083_v38  ;;  %v3759_v38 = vld [vmem:[%s4807_s6 + $0x38] sm:$0xff]  }
 0x7ea   : > { %2100 = vrot.lane.b32.xlu0 %v4931_v53, %s4275_s27 }
 0x7f3   : > { %1633 = vadd.xlane.f32.xlu1 %v1632_v40 }
 0x7f7   : > { %1867 = vadd.xlane.f32.xlu1 %v1866_v41 }
 0x809   : > { %1636 = vadd.xlane.f32.xlu0 %v1635_v5 }
 0x80d   : > { %1864 = vadd.xlane.f32.xlu0 %v1863_v43 }
 0x84b   : > { %v2082_v44 = vpop.xlane.xlu1 %2081 }
 0x84c   : > { %v2086_v45 = vsub.f32 %v2078_v16, %v2082_v44 }
 0x84e   : > { %v2088_v46 = vmul.f32 1.442695, %v2086_v45 }
 0x84f   : > { %v2147_v47 = vpop.permute.xlu1 %2146 }
 0x850   : > { %3812 = vpow2.f32 %v2088_v46  ;;  %3546 = vmatpush3.bf16.msra.mxu0 %v2147_v47 }
 0x85a   : > { %v3813_v53 = vpop.eup %3812 }
 0x85b   : > { %v2092_v10 = vsel %vm1401_vm2, %v3813_v53, 0.0  ;;  %v2098_v56 = vpack.c.bf16 %v3813_v53, %v3813_v53 }
 0x85c   : > { %2093 = vadd.xlane.f32.xlu0 %v2092_v10 }
 0x860   : > { %1415 = vadd.xlane.f32.xlu0 %v1414_v49 }
 0x861   : > { %v2085_v50 = vpop.xlane.xlu0 %2084 }
 0x862   : > { %v2087_v20 = vsub.f32 %v2079_v30, %v2085_v50 }
 0x864   : > { %v2090_v52 = vmul.f32 1.442695, %v2087_v20 }
 0x865   : > { %v2101_v55 = vpop.permute.xlu0 %2100 }
 0x866   : > { %3814 = vpow2.f32 %v2090_v52  ;;  %3540 = vmatpush3.bf16.msra.mxu1 %v2101_v55 }
 0x867   : > { %3551 = vmatprep.subr.bf16.mxu1 %v4270_v3 }
 0x869   : > { %3542 = vmatmul.mubr.msk.bf16.vlgmr.msra.gmra.mrb[28].mxu1 %vm1401_vm2, %v2098_v56 }
 0x86a   : > { %3567 = vmatprep.mubr.msk.bf16.mxu1 %vm4272_vm0, %v4270_v3  ;;  %3552 = vmatpush3.bf16.msra.mxu1 %v3752_v6  ;;  %v3769_v6 = vld [vmem:[%s4814_s22 + $0x30] ss:$8 sps:$4 sm:$0xff]  }
 0x86b   : > { %3553 = vmatprep.subr.bf16.mxu1 %v4270_v3 }
 0x86e   : > { %3554 = vmatpush3.bf16.msra.mxu1 %v3753_v8  ;;  %v3774_v8 = vld [vmem:[%s4814_s22 + $0x44] ss:$8 sps:$4 sm:$0xff]  }
 0x86f   : > { %3555 = vmatprep.subr.bf16.mxu1 %v4270_v3 }
 0x870   : > { %v3815_v57 = vpop.eup %3814 }
 0x871   : > { %v2095_v51 = vsel %vm1401_vm2, %v3815_v57, 0.0  ;;  %v2099_v58 = vpack.c.bf16 %v3815_v57, %v3815_v57 }
 0x872   : > { %2096 = vadd.xlane.f32.xlu1 %v2095_v51  ;;  %3556 = vmatpush3.bf16.msra.mxu1 %v3754_v9  ;;  %v3772_v9 = vld [vmem:[%s4814_s22 + $0x40] ss:$8 sps:$4 sm:$0xff]  }
 0x873   : > { %3548 = vmatmul.mubr.msk.bf16.vlgmr.msra.gmra.mrb[40].mxu0 %vm1401_vm2, %v2099_v58  ;;  %3557 = vmatprep.subr.bf16.mxu1 %v4270_v3 }
 0x874   : > { %2506 = vmatprep.mubr.bf16.mxu0 %v4271_v4 }
 0x876   : > { %1418 = vadd.xlane.f32.xlu1 %v1417_v37  ;;  %v3760_v37 = vld [vmem:[%s4814_s22] ss:$8 sps:$4 sm:$0xff]  }
 0x880   : > { %v1634_v59 = vpop.xlane.xlu1 %1633 }
 0x881   : > { %3816 = vrcp.f32 %v1634_v59  ;;  %v3762_v59 = vld [vmem:[%s4814_s22 + $0x4] ss:$8 sps:$4 sm:$0xff]  }
 0x882   : > { %2474 = vmatprep.subr.bf16.mxu0 %v3762_v59 }
 0x883   : > { %2475 = vmatpush1.bf16.msra.mxu0 %v3760_v37 }
 0x884   : > { %v1868_v61 = vpop.xlane.xlu1 %1867 }
 0x885   : > { %3818 = vrcp.f32 %v1868_v61  ;;  %v3765_v61 = vld [vmem:[%s4814_s22 + $0x14] ss:$8 sps:$4 sm:$0xff]  }
 0x886   : > { %2476 = vmatprep.subr.bf16.mxu0 %v3765_v61 }
 0x88b   : > { %v3817_v62 = vpop.eup %3816 }
 0x88c   : > { %v1736_v60 = vmul.f32 %v3817_v62, %v5043_v25  ;;  %v3763_v62 = vld [vmem:[%s4814_s22 + $0x10] ss:$8 sps:$4 sm:$0xff]  }
 0x88d   : > { %2477 = vmatpush1.bf16.msra.mxu0 %v3763_v62 }
 0x88e   : > { %1740 = vrot.lane.b32.xlu0 %v1736_v60, %s4275_s27 }
 0x88f   : > { %v3819_v2 = vpop.eup %3818 }
 0x890   : > { %v1966_v7 = vmul.f32 %v3819_v2, %v1957_v22  ;;  %v3755_v22 = vld [vmem:[%s4807_s6 + $0x18] sm:$0xff]   ;;  %s5379_s6 = scalar_lea.vmem [#allocation12], %s4786_s25 }
 0x891   : > { %3558 = vmatpush3.bf16.msra.mxu1 %v3755_v22  ;;  %v3287_v49 = vld [vmem:[%s5379_s6] ss:$0 sm:$0xff] }
 0x892   : > { %1971 = vrot.lane.b32.xlu0 %v1966_v7, %s4274_s16  ;;  %3559 = vmatprep.subr.bf16.mxu1 %v4270_v3 }
 0x895   : > { %3560 = vmatpush3.bf16.msra.mxu1 %v3756_v23  ;;  %v3296_v23 = vld [vmem:[%s989_s14] ss:$0 sm:$0xff] }
 0x896   : > { %v1637_v4 = vpop.xlane.xlu0 %1636  ;;  %3561 = vmatprep.subr.bf16.mxu1 %v4270_v3 }
 0x897   : > { %3820 = vrcp.f32 %v1637_v4 }
 0x899   : > { %3562 = vmatpush3.bf16.msra.mxu1 %v3757_v24 }
 0x89a   : > { %v1865_v39 = vpop.xlane.xlu0 %1864  ;;  %3563 = vmatprep.subr.bf16.mxu1 %v4270_v3 }
 0x89b   : > { %3822 = vrcp.f32 %v1865_v39 }
 0x89d   : > { %3564 = vmatpush3.bf16.msra.mxu1 %v3758_v29 }
 0x89e   : > { %3565 = vmatprep.subr.bf16.mxu1 %v4270_v3 }
 0x8a1   : > { %v3821_v63 = vpop.eup %3820  ;;  %3566 = vmatpush3.bf16.msra.mxu1 %v3759_v38 }
 0x8a2   : > { %v1737_v0 = vmul.f32 %v3821_v63, %v5046_v42 }
 0x8a4   : > { %1742 = vrot.lane.b32.xlu1 %v1737_v0, %s4275_s27  ;;  %v3768_v0 = vld [vmem:[%s4814_s22 + $0x24] ss:$8 sps:$4 sm:$0xff]  }
 0x8a5   : > { %v3823_v1 = vpop.eup %3822  ;;  %2478 = vmatprep.subr.bf16.mxu0 %v3768_v0 }
 0x8a6   : > { %v1965_v25 = vmul.f32 %v3823_v1, %v5073_v11  ;;  %v3766_v1 = vld [vmem:[%s4814_s22 + $0x20] ss:$8 sps:$4 sm:$0xff]  }
 0x8a7   : > { %2479 = vmatpush1.bf16.msra.mxu0 %v3766_v1 }
 0x8a8   : > { %1969 = vrot.lane.b32.xlu1 %v1965_v25, %s4274_s16  ;;  %v3771_v25 = vld [vmem:[%s4814_s22 + $0x34] ss:$8 sps:$4 sm:$0xff]  }
 0x8a9   : > { %2480 = vmatprep.subr.bf16.mxu0 %v3771_v25 }
 0x8ab   : > { %2481 = vmatpush1.bf16.msra.mxu0 %v3769_v6 }
 0x8ac   : > { %2482 = vmatprep.subr.bf16.mxu0 %v3774_v8 }
 0x8af   : > { %2483 = vmatpush1.bf16.msra.mxu0 %v3772_v9 }
 0x8e9   : > { %v2094_v42 = vpop.xlane.xlu0 %2093 }
 0x8ed   : > { %v1416_v12 = vpop.xlane.xlu0 %1415 }
 0x8ee   : > { %3824 = vrcp.f32 %v1416_v12  ;;  %v3775_v12 = vld [vmem:[%s4814_s22 + $0x50] ss:$8 sps:$4 sm:$0xff]  }
 0x8f8   : > { %v3825_v13 = vpop.eup %3824 }
 0x8f9   : > { %v1510_v11 = vmul.f32 %v3825_v13, %v4997_v48  ;;  %v3780_v13 = vld [vmem:[%s4814_s22 + $0x64] ss:$8 sps:$4 sm:$0xff]  }
 0x8fb   : > { %1512 = vst.msk [vmem:[#allocation3] sm:$0xff] %vm1306_vm1, %v1510_v11  ;;  %v3778_v11 = vld [vmem:[%s4814_s22 + $0x60] ss:$8 sps:$4 sm:$0xff]  }
 0x8ff   : > { %v2097_v14 = vpop.xlane.xlu1 %2096 }
 0x900   : > { %v1741_v15 = vpop.permute.xlu0 %1740 }
 0x901   : > { %1747 = vst.msk [vmem:[#allocation3] sm:$0xff] %vm1746_vm3, %v1741_v15  ;;  %v3781_v15 = vld [vmem:[%s4814_s22 + $0x70] ss:$8 sps:$4 sm:$0xff]  }
 0x903   : > { %v1419_v16 = vpop.xlane.xlu1 %1418 }
 0x904   : > { %3826 = vrcp.f32 %v1419_v16  ;;  %v1972_v21 = vpop.permute.xlu0 %1971 }
 0x905   : > { %3828 = vrcp.f32 %v2094_v42  ;;  %v3777_v42 = vld [vmem:[%s4814_s22 + $0x54] ss:$8 sps:$4 sm:$0xff]  }
 0x906   : > { %3830 = vrcp.f32 %v2097_v14  ;;  %2484 = vmatprep.subr.bf16.mxu0 %v3777_v42  ;;  %v3783_v14 = vld [vmem:[%s4814_s22 + $0x74] ss:$8 sps:$4 sm:$0xff]   ;;  %s5387_s22 = sld [smem:[#allocation35_spill]] (!%p3333_p4) }
 0x907   : > { %2485 = vmatpush1.bf16.msra.mxu0 %v3775_v12 }
 0x908   : > { %2486 = vmatprep.subr.bf16.mxu0 %v3780_v13 }
 0x90b   : > { %2487 = vmatpush1.bf16.msra.mxu0 %v3778_v11 }
 0x90c   : > { %2488 = vmatprep.subr.bf16.mxu0 %v3783_v14 }
 0x90e   : > { %v3827_v17 = vpop.eup %3826 }
 0x90f   : > { %v1511_v18 = vmul.f32 %v3827_v17, %v4999_v54  ;;  %v3829_v54 = vpop.eup %3828  ;;  %2489 = vmatpush1.bf16.msra.mxu0 %v3781_v15 }
 0x910   : > { %v3831_v40 = vpop.eup %3830 }
 0x911   : > { %1513 = vst.msk [vmem:[#allocation3 + $0x8] sm:$0xff] %vm1306_vm1, %v1511_v18 }
 0x916   : > { %v1743_v19 = vpop.permute.xlu1 %1742 }
 0x917   : > { %1748 = vst.msk [vmem:[#allocation3 + $0x8] sm:$0xff] %vm1746_vm3, %v1743_v19 }
 0x918   : > { %1977 = vst.msk [vmem:[#allocation3 + $0x8] sm:$0xff] %vm1975_vm4, %v1972_v21 }
 0x91a   : > { %v1970_v48 = vpop.permute.xlu1 %1969 }
 0x91b   : > { %1976 = vst.msk [vmem:[#allocation3] sm:$0xff] %vm1975_vm4, %v1970_v48 }
 0x93c   : > { %v2140_v26 = vpop.f32.mrb[28].mxu1 }
 0x93d   : > { %v2194_v30 = vmul.f32 %v3829_v54, %v2140_v26  ;;  %v3543_v31 = vpop.f32.mrb[29].mxu1 }
 0x93e   : > { %v2143_v32 = vpop.f32.mrb[30].mxu1 }
 0x93f   : > { %v3544_v35 = vpop.f32.mrb[31].mxu1  ;;  %2198 = vrot.lane.b32.xlu1 %v2194_v30, %s4273_s26  ;;  %v3297_v30 = vld [vmem:[%s992_s5] ss:$0 sm:$0xff]  ;;  %s5382_s5 = scalar_lea.vmem [#allocation18], %s4786_s25 }
 0x946   : > { %v2186_v41 = vpop.f32.mrb[40].mxu0 }
 0x947   : > { %v2195_v5 = vmul.f32 %v3831_v40, %v2186_v41  ;;  %v3549_v43 = vpop.f32.mrb[41].mxu0  ;;  %v3784_v40 = vld [vmem:[%s4822_s9 + $0x40] sm:$0xff]  }
 0x948   : > { %v2189_v44 = vpop.f32.mrb[42].mxu0  ;;  %v3785_v41 = vld [vmem:[%s4822_s9] sm:$0xff]   ;;  %3404 = vmatprep.subr.bf16.mxu1 %v3784_v40  ;;  %v3787_v43 = vld [vmem:[%s4822_s9 + $0x8] sm:$0xff]  }
 0x949   : > { %2200 = vrot.lane.b32.xlu0 %v2195_v5, %s4273_s26  ;;  %v3550_v45 = vpop.f32.mrb[43].mxu0  ;;  %v3786_v5 = vld [vmem:[%s4822_s9 + $0x48] sm:$0xff]   ;;  %v3788_v44 = vld [vmem:[%s4822_s9 + $0x50] sm:$0xff]  }
 0x94a   : > { %v3789_v45 = vld [vmem:[%s4822_s9 + $0x10] sm:$0xff]  }
 0x9b1   : > { %v2199_v46 = vpop.permute.xlu1 %2198 }
 0x9b2   : > { %2205 = vst.msk [vmem:[#allocation3] sm:$0xff] %vm2204_vm5, %v2199_v46  ;;  %v3790_v46 = vld [vmem:[%s4822_s9 + $0x58] sm:$0xff]  }
 0x9b9   : > { %v2207_v53 = vld [vmem:[#allocation3] sm:$0xff] }
 0x9bb   : > { %v2201_v47 = vpop.permute.xlu0 %2200 }
 0x9bc   : > { %2206 = vst.msk [vmem:[#allocation3 + $0x8] sm:$0xff] %vm2204_vm5, %v2201_v47  ;;  %v3791_v47 = vld [vmem:[%s4822_s9 + $0x18] sm:$0xff]  }
 0x9c3   : > { %v2208_v10 = vld [vmem:[#allocation3 + $0x8] sm:$0xff] }
 0x9c4   : > { %v2225_v3 = vpack.c.bf16 %v2208_v10, %v2207_v53  ;;  %v3792_v53 = vld [vmem:[%s4822_s9 + $0x60] sm:$0xff]  }
 0x9c5   : > { %v3793_v10 = vld [vmem:[%s4822_s9 + $0x20] sm:$0xff]  }
 0x9c6   : > { %3568 = vmatmul.mubr.bf16.vlgmr.msra.gmra.mrb[32].mxu1 %v2225_v3  ;;  %v3794_v3 = vld [vmem:[%s4822_s9 + $0x68] sm:$0xff]  }
 0x9c7   : > { %3405 = vmatpush3.bf16.msra.mxu1 %v3785_v41 }
 0x9c8   : > { %3406 = vmatprep.subr.bf16.mxu1 %v3786_v5 }
 0x9cb   : > { %3407 = vmatpush3.bf16.msra.mxu1 %v3787_v43 }
 0x9cc   : > { %3408 = vmatprep.subr.bf16.mxu1 %v3788_v44  ;;  %v3314_v44 = vld [vmem:[%s5382_s5] ss:$0 sm:$0xff] }
 0x9cf   : > { %3409 = vmatpush3.bf16.msra.mxu1 %v3789_v45 }
 0x9d0   : > { %3410 = vmatprep.subr.bf16.mxu1 %v3790_v46 }
 0x9d3   : > { %3411 = vmatpush3.bf16.msra.mxu1 %v3791_v47 }
 0x9d4   : > { %3412 = vmatprep.subr.bf16.mxu1 %v3792_v53 }
 0x9d7   : > { %3413 = vmatpush3.bf16.msra.mxu1 %v3793_v10 }
 0x9d8   : > { %3414 = vmatprep.subr.bf16.mxu1 %v3794_v3 }
 0xa99   : > { %v2315_v50 = vpop.f32.mrb[32].mxu1 }
 0xa9a   : > { %v2316_v20 = vadd.f32 %v3287_v49, %v2315_v50  ;;  %v3569_v52 = vpop.f32.mrb[33].mxu1  ;;  %v3796_v50 = vld [vmem:[%s4822_s9 + $0x70] sm:$0xff]  }
 0xa9b   : > { %v2318_v55 = vpop.f32.mrb[34].mxu1  ;;  %v3798_v52 = vld [vmem:[%s4822_s9 + $0x78] sm:$0xff]  }
 0xa9c   : > { %v2319_v56 = vadd.f32 %v3287_v49, %v2318_v55  ;;  %v3570_v57 = vpop.f32.mrb[35].mxu1  ;;  %v2322_v51 = vadd.f32 %v2316_v20, %v4895_v27  ;;  %v3795_v49 = vld [vmem:[%s4822_s9 + $0x28] sm:$0xff]   ;;  %v3797_v20 = vld [vmem:[%s4822_s9 + $0x30] sm:$0xff]   ;;  %v3799_v55 = vld [vmem:[%s4822_s9 + $0x38] sm:$0xff]  }
 0xa9d   : > { %3415 = vmatpush3.bf16.msra.mxu1 %v3795_v49 }
 0xa9e   : > { %2326 = vadd.xlane.f32.xlu1 %v2322_v51  ;;  %v2323_v58 = vadd.f32 %v2319_v56, %v4897_v28  ;;  %3416 = vmatprep.subr.bf16.mxu1 %v3796_v50  ;;  %v2382_v56 = vld [vmem:[%s4820_s10] sm:$0x3] }
 0xa9f   : > { %v2387_v57 = vrot.slane %v2382_v56, %v1147_v34 }
 0xaa0   : > { %2328 = vadd.xlane.f32.xlu0 %v2323_v58 }
 0xaa1   : > { %3417 = vmatpush3.bf16.msra.mxu1 %v3797_v20 }
 0xaa2   : > { %3418 = vmatprep.subr.bf16.mxu1 %v3798_v52 }
 0xaa5   : > { %3419 = vmatpush3.bf16.msra.mxu1 %v3799_v55 }
 0xb2b   : > { %v2327_v60 = vpop.xlane.xlu1 %2326 }
 0xb2c   : > { %v2331_v2 = vmul.f32 0.0078125, %v2327_v60 }
 0xb2d   : > { %v2329_v7 = vpop.xlane.xlu0 %2328 }
 0xb2e   : > { %v2333_v27 = vsub.f32 %v2322_v51, %v2331_v2  ;;  %v2332_v28 = vmul.f32 0.0078125, %v2329_v7  ;;  %v2391_v51 = vrot.slane %v2382_v56, %v1151_v36 }
 0xb30   : > { %v2334_v4 = vsub.f32 %v2323_v58, %v2332_v28  ;;  %v2335_v39 = vmul.f32 %v2333_v27, %v2333_v27 }
 0xb32   : > { %2337 = vadd.xlane.f32.xlu0 %v2335_v39  ;;  %v2336_v63 = vmul.f32 %v2334_v4, %v2334_v4 }
 0xb34   : > { %2339 = vadd.xlane.f32.xlu1 %v2336_v63 }
 0xbbf   : > { %v2338_v16 = vpop.xlane.xlu0 %2337 }
 0xbc0   : > { %v2341_v17 = vmul.f32 0.0078125, %v2338_v16 }
 0xbc1   : > { %v2340_v18 = vpop.xlane.xlu1 %2339 }
 0xbc2   : > { %v2343_v19 = vadd.f32 1e-05, %v2341_v17  ;;  %v2342_v21 = vmul.f32 0.0078125, %v2340_v18 }
 0xbc4   : > { %3832 = vrsqrt.f32 %v2343_v19  ;;  %v2344_v48 = vadd.f32 1e-05, %v2342_v21 }
 0xbc6   : > { %3834 = vrsqrt.f32 %v2344_v48 }
 0xbce   : > { %v3833_v22 = vpop.eup %3832 }
 0xbcf   : > { %v2347_v24 = vmul.f32 %v3833_v22, %v2333_v27 }
 0xbd0   : > { %v3835_v54 = vpop.eup %3834 }
 0xbd1   : > { %v2348_v26 = vmul.f32 %v3835_v54, %v2334_v4  ;;  %v2355_v29 = vmul.f32 %v3296_v23, %v2347_v24 }
 0xbd3   : > { %v2356_v31 = vmul.f32 %v3296_v23, %v2348_v26  ;;  %v5157_v32 = vadd.f32 %v3297_v30, %v2355_v29 }
 0xbd5   : > { %v5159_v35 = vadd.f32 %v3297_v30, %v2356_v31 }
 0xbd7   : > { %v2381_v38 = vpack.c.bf16 %v5159_v35, %v5157_v32 }
 0xbd9   : > { %2507 = vmatmul.mubr.bf16.vlgmr.msra.gmra.mrb[44].mxu0 %v2381_v38 }
 0xcac   : > { %v2508_v58 = vpop.f32.mrb[44].mxu0 }
 0xcad   : > { %v2509_v37 = vadd.f32 %v2508_v58, %v2387_v57  ;;  %v2510_v59 = vpop.f32.mrb[45].mxu0 }
 0xcae   : > { %v2511_v61 = vadd.f32 %v2510_v59, %v2391_v51  ;;  %v2512_v62 = vpop.f32.mrb[46].mxu0 }
 0xcaf   : > { %v2517_v60 = vmul.f32 %v2509_v37, %v2509_v37  ;;  %v2513_v2 = vadd.f32 %v2512_v62, %v2387_v57  ;;  %v2514_v7 = vpop.f32.mrb[47].mxu0 }
 0xcb0   : > { %v2518_v27 = vmul.f32 %v2511_v61, %v2511_v61  ;;  %v2515_v28 = vadd.f32 %v2514_v7, %v2391_v51 }
 0xcb1   : > { %v2521_v4 = vmul.f32 %v2517_v60, %v2509_v37  ;;  %v2519_v39 = vmul.f32 %v2513_v2, %v2513_v2 }
 0xcb2   : > { %v2522_v63 = vmul.f32 %v2518_v27, %v2511_v61  ;;  %v2520_v0 = vmul.f32 %v2515_v28, %v2515_v28  ;;  %v3331_v27 = vld [vmem:[%s995_s15] ss:$0 sm:$0xff]  ;;  %s5386_s15 = sld [smem:[#allocation51_spill]] (!%p3333_p4) }
 0xcb3   : > { %v2525_v1 = vmul.f32 0.044715, %v2521_v4  ;;  %v2523_v25 = vmul.f32 %v2519_v39, %v2513_v2  ;;  %v3332_v39 = vld [vmem:[%s998_s23] ss:$0 sm:$0xff] }
 0xcb4   : > { %v2526_v34 = vmul.f32 0.044715, %v2522_v63  ;;  %v2524_v6 = vmul.f32 %v2520_v0, %v2515_v28 }
 0xcb5   : > { %v2529_v33 = vadd.f32 %v2525_v1, %v2509_v37  ;;  %v2527_v36 = vmul.f32 0.044715, %v2523_v25 }
 0xcb6   : > { %v2530_v8 = vadd.f32 %v2526_v34, %v2511_v61  ;;  %v2528_v9 = vmul.f32 0.044715, %v2524_v6 }
 0xcb7   : > { %v2533_v42 = vmul.f32 0.7978846, %v2529_v33  ;;  %v2531_v12 = vadd.f32 %v2527_v36, %v2513_v2  ;;  %v4276_v33 = vmov (!%p3333_p4), 0.0  }
 0xcb8   : > { %v2534_v13 = vmul.f32 0.7978846, %v2530_v8  ;;  %v2532_v11 = vadd.f32 %v2528_v9, %v2515_v28  ;;  %v3848_v6 = vld [vmem:[%s5386_s15] sm:$0xff] (!%p3333_p4)   ;;  %3571 = vmatprep.subr.bf16.mxu0 (!%p3333_p4), %v4276_v33  ;;  %v3849_v36 = vld [vmem:[%s5386_s15 + $0x8] sm:$0xff] (!%p3333_p4)   ;;  %3587 = vmatprep.mubr.msk.bf16.mxu0 (!%p3333_p4), %vm4277_vm6, %v4276_v33  ;;  %v3850_v8 = vld [vmem:[%s5386_s15 + $0x10] sm:$0xff] (!%p3333_p4)  }
 0xcb9   : > { %3836 = vtanh.f32 %v2533_v42  ;;  %v2535_v14 = vmul.f32 0.7978846, %v2531_v12  ;;  %3572 = vmatpush3.bf16.msra.mxu0 (!%p3333_p4), %v3848_v6  ;;  %v3851_v9 = vld [vmem:[%s5386_s15 + $0x18] sm:$0xff] (!%p3333_p4)   ;;  %v3852_v42 = vld [vmem:[%s5386_s15 + $0x20] sm:$0xff] (!%p3333_p4)   ;;  %v3853_v12 = vld [vmem:[%s5386_s15 + $0x28] sm:$0xff] (!%p3333_p4)  }
 0xcba   : > { %3838 = vtanh.f32 %v2534_v13  ;;  %v2536_v15 = vmul.f32 0.7978846, %v2532_v11  ;;  %3573 = vmatprep.subr.bf16.mxu0 (!%p3333_p4), %v4276_v33  ;;  %v3854_v13 = vld [vmem:[%s5386_s15 + $0x30] sm:$0xff] (!%p3333_p4)   ;;  %v2779_v11 = vld [vmem:[%s5387_s22] sm:$0xff] (!%p3333_p4) }
 0xcbb   : > { %3840 = vtanh.f32 %v2535_v14 }
 0xcbc   : > { %3842 = vtanh.f32 %v2536_v15 }
 0xcbd   : > { %3574 = vmatpush3.bf16.msra.mxu0 (!%p3333_p4), %v3849_v36 }
 0xcbe   : > { %3575 = vmatprep.subr.bf16.mxu0 (!%p3333_p4), %v4276_v33 }
 0xcc1   : > { %3576 = vmatpush3.bf16.msra.mxu0 (!%p3333_p4), %v3850_v8 }
 0xcc2   : > { %3577 = vmatprep.subr.bf16.mxu0 (!%p3333_p4), %v4276_v33 }
 0xcc3   : > { %v3837_v16 = vpop.eup %3836 }
 0xcc4   : > { %v3839_v17 = vpop.eup %3838  ;;  %v2541_v18 = vadd.f32 1.0, %v3837_v16  ;;  %v3855_v16 = vld [vmem:[%s5386_s15 + $0x38] sm:$0xff] (!%p3333_p4)  }
 0xcc5   : > { %v3841_v19 = vpop.eup %3840  ;;  %v2542_v21 = vadd.f32 1.0, %v3839_v17  ;;  %3578 = vmatpush3.bf16.msra.mxu0 (!%p3333_p4), %v3851_v9 }
 0xcc6   : > { %v3843_v48 = vpop.eup %3842  ;;  %v2545_v22 = vmul.f32 0.5, %v2541_v18  ;;  %v2543_v23 = vadd.f32 1.0, %v3841_v19  ;;  %3579 = vmatprep.subr.bf16.mxu0 (!%p3333_p4), %v4276_v33  ;;  %v3334_v18 = vld [vmem:[#allocation19] ss:$0 sm:$0xff] (!%p3333_p4) }
 0xcc7   : > { %v2544_v24 = vadd.f32 1.0, %v3843_v48  ;;  %v2546_v54 = vmul.f32 0.5, %v2542_v21 }
 0xcc8   : > { %v2547_v26 = vmul.f32 0.5, %v2543_v23  ;;  %v2549_v30 = vmul.f32 %v2545_v22, %v2509_v37 }
 0xcc9   : > { %v2548_v29 = vmul.f32 0.5, %v2544_v24  ;;  %v2550_v38 = vmul.f32 %v2546_v54, %v2511_v61  ;;  %3580 = vmatpush3.bf16.msra.mxu0 (!%p3333_p4), %v3852_v42 }
 0xcca   : > { %v2551_v31 = vmul.f32 %v2547_v26, %v2513_v2  ;;  %3581 = vmatprep.subr.bf16.mxu0 (!%p3333_p4), %v4276_v33 }
 0xccb   : > { %v2552_v40 = vmul.f32 %v2548_v29, %v2515_v28 }
 0xccc   : > { %v2585_v41 = vpack.c.bf16 %v2551_v31, %v2549_v30 }
 0xccd   : > { %v2586_v5 = vpack.c.bf16 %v2552_v40, %v2550_v38  ;;  %3582 = vmatpush3.bf16.msra.mxu0 (!%p3333_p4), %v3853_v12 }
 0xcce   : > { %3583 = vmatprep.subr.bf16.mxu0 (!%p3333_p4), %v4276_v33 }
 0xccf   : > { %2722 = vmatprep.mubr.bf16.mxu1 %v2586_v5 }
 0xcd0   : > { %2723 = vmatmul.mubr.bf16.vlgmr.msra.gmra.mrb[36].mxu1 %v2585_v41 }
 0xcd1   : > { %3584 = vmatpush3.bf16.msra.mxu0 (!%p3333_p4), %v3854_v13 }
 0xcd2   : > { %3585 = vmatprep.subr.bf16.mxu0 (!%p3333_p4), %v4276_v33 }
 0xcd5   : > { %3586 = vmatpush3.bf16.msra.mxu0 (!%p3333_p4), %v3855_v16 }
 0xda3   : > { %v3420_v43 = vpop.f32.mrb[36].mxu1 }
 0xda4   : > { %v3421_v45 = vpop.f32.mrb[37].mxu1 }
 0xda5   : > { %v3422_v46 = vadd.f32 %v3421_v45, %v3420_v43  ;;  %v3423_v47 = vpop.f32.mrb[38].mxu1 }
 0xda6   : > { %v3424_v53 = vpop.f32.mrb[39].mxu1 }
 0xda7   : > { %v2725_v10 = vadd.f32 %v3422_v46, %v3314_v44  ;;  %v3425_v3 = vadd.f32 %v3424_v53, %v3423_v47 }
 0xda9   : > { %v2728_v49 = vadd.f32 %v3425_v3, %v3314_v44  ;;  %v2731_v50 = vadd.f32 %v2725_v10, %v5157_v32 }
 0xdab   : > { %2735 = vadd.xlane.f32.xlu0 %v2731_v50  ;;  %v2732_v20 = vadd.f32 %v2728_v49, %v5159_v35 }
 0xdad   : > { %2737 = vadd.xlane.f32.xlu1 %v2732_v20 }
 0xe38   : > { %v2736_v52 = vpop.xlane.xlu0 %2735 }
 0xe39   : > { %v2739_v55 = vmul.f32 0.0078125, %v2736_v52 }
 0xe3a   : > { %v2738_v56 = vpop.xlane.xlu1 %2737 }
 0xe3b   : > { %v2741_v57 = vsub.f32 %v2731_v50, %v2739_v55  ;;  %v2740_v51 = vmul.f32 0.0078125, %v2738_v56 }
 0xe3d   : > { %v2742_v58 = vsub.f32 %v2732_v20, %v2740_v51  ;;  %v2743_v37 = vmul.f32 %v2741_v57, %v2741_v57 }
 0xe3f   : > { %2745 = vadd.xlane.f32.xlu0 %v2743_v37  ;;  %v2744_v59 = vmul.f32 %v2742_v58, %v2742_v58 }
 0xe41   : > { %2747 = vadd.xlane.f32.xlu1 %v2744_v59 }
 0xecc   : > { %v2746_v61 = vpop.xlane.xlu0 %2745 }
 0xecd   : > { %v2749_v62 = vmul.f32 0.0078125, %v2746_v61 }
 0xece   : > { %v2748_v60 = vpop.xlane.xlu1 %2747 }
 0xecf   : > { %v2751_v32 = vadd.f32 1e-05, %v2749_v62  ;;  %v2750_v2 = vmul.f32 0.0078125, %v2748_v60 }
 0xed1   : > { %3844 = vrsqrt.f32 %v2751_v32  ;;  %v2752_v35 = vadd.f32 1e-05, %v2750_v2 }
 0xed3   : > { %3846 = vrsqrt.f32 %v2752_v35 }
 0xedb   : > { %v3845_v7 = vpop.eup %3844 }
 0xedc   : > { %v2755_v28 = vmul.f32 %v3845_v7, %v2741_v57 }
 0xedd   : > { %v3847_v4 = vpop.eup %3846 }
 0xede   : > { %v2763_v63 = vmul.f32 %v3331_v27, %v2755_v28  ;;  %v2756_v0 = vmul.f32 %v3847_v4, %v2742_v58  ;;  %2778 = sbr.rel (%p3333_p4) target bundleno = 4033 (0xfc1), region = 140 }
 0xee0   : > { %v2771_v1 = vadd.f32 %v3332_v39, %v2763_v63  ;;  %v2764_v25 = vmul.f32 %v3331_v27, %v2756_v0 }
 0xee2   : > { %2773 = vst [vmem:[#allocation2] sm:$0xff] %v2771_v1  ;;  %v2772_v34 = vadd.f32 %v3332_v39, %v2764_v25  ;;  %v2780_v14 = vadd.f32 (!%p3333_p4), %v2779_v11, %v2771_v1 }
 0xee4   : > { %2774 = vst [vmem:[#allocation2 + $0x8] sm:$0xff] %v2772_v34  ;;  %v2781_v15 = vadd.f32 (!%p3333_p4), %v2779_v11, %v2772_v34 }
 0xee6   : > { %v2798_v17 = vpack.c.bf16 %v2781_v15, %v2780_v14 }
 0xee8   : > { %3588 = vmatmul.mubr.bf16.vlgmr.msra.gmra.mrb[0].mxu0 %v2798_v17 }
 0xfbb   : > { %v2888_v19 = vpop.f32.mrb[0].mxu0 }
 0xfbc   : > { %v2889_v21 = vadd.f32 %v3334_v18, %v2888_v19  ;;  %v3589_v48 = vpop.f32.mrb[1].mxu0 }
 0xfbd   : > { %v2891_v22 = vpop.f32.mrb[2].mxu0 }
 0xfbe   : > { %2895 = vst [vmem:[#allocation21] sm:$0xff] %v2889_v21  ;;  %v2892_v23 = vadd.f32 %v3334_v18, %v2891_v22  ;;  %v3590_v24 = vpop.f32.mrb[3].mxu0 }
 0xfc0   : > { %2896 = vst [vmem:[#allocation21 + $0x8] sm:$0xff] %v2892_v23 }
 0xfc1 PF: > { %p3652_p2 = scmp.eq.s32.totalorder %s4590_s30, 1  ;;  %s4278_s5 = smov [#allocation21]  }
 0xfc2   : > { %s2906_s25 = sshll.u32 %s4278_s5, 4  ;;  %s2907_s25 = int_to_ptr.vmem [resolvable:$true] %s2906_s25 }
 0xfc3   : > { %s4154_s10 = scalar_lea.vmem %s2907_s25, 256  ;;  %p4161_p9 = scmp.lt.s32.totalorder %s2907_s25, %s2907_s25 }
 0xfc4   : > { %p4155_p5 = scmp.ne.s32.totalorder %s2907_s25, %s4154_s10  ;;  %p4162_p3 = scmp.lt.s32.totalorder %s4154_s10, %s4154_s10 }
 0xfc6   : > { %p4156_p11 = pnand %p4155_p5, %p3652_p2  ;;  %p4163_p12 = por %p4162_p3, %p4161_p9 }
 0xfc8   : > { %p4157_p10 = pneg %p4156_p11 }
 0xfca   : > { %p4164_p7 = pnand %p4163_p12, %p4157_p10 }
 0xfcc   : > { %4167 = shalt.err (!%p4164_p7)
}
 0xfcd   : > { %s5388_s2 = sld [smem:[#allocation53_spill]] }
 0xfd3   : > { %s4168_s20 = scalar_lea.hbm %s5388_s2, 256 }
 0xfd4   : > { %p4169_p8 = scmp.ne.s32.totalorder %s5388_s2, %s4168_s20  ;;  %p4174_p6 = scmp.lt.u32.totalorder %s4168_s20, %s5388_s2 }
 0xfd6   : > { %p4170_p13 = pnand %p4169_p8, %p3652_p2 }
 0xfd8   : > { %p4171_p1 = pneg %p4170_p13 }
 0xfda   : > { %p4176_p0 = pnand %p4174_p6, %p4171_p1 }
 0xfdc   : > { %4179 = shalt.err (!%p4176_p0)
}
 0xfdd   : > { %s4279_s4 = smov 128   ;;  %s4280_s23 = smov 8  }
 0xfde   : > { %3614 = dma.vmem_to_hbm [thread:$0]  (%p3652_p2), %s2907_s25, 256, %s5388_s2, [#allocation6], %s4279_s4, %s4279_s4, %s4280_s23  }
 0xfdf   : > { %4229 = dma.done.wait (%p3652_p2), [#allocation6], 256  }
 0xfe0   : > { %4231 = vsyncadd (%p3652_p2), [#allocation6], 4294967040 }
 0xfe1 PF: > { %s45_s19 = sadd.s32 1, %s4254_s19   ;;  %s5389_s27 = sld [smem:[#allocation29_spill]] }
 0xfe2   : > { %p42_p4 = scmp.ge.s32.totalorder %s45_s19, 4   ;;  %s5390_s28 = sld [smem:[#allocation30_spill]] }
 0xfe3   : > { %s5391_s29 = sld [smem:[#allocation34_spill]]  ;;  %s5392_s30 = sld [smem:[#allocation32_spill]] }
 0xfe4   : > { %s5393_s0 = sld [smem:[#allocation33_spill]]  ;;  %44 = sbr.rel (!%p42_p4) target bundleno = 34 (0x22), region = 256 }
 0xfeb   :  { %2922 = vsyncpa [#allocation5], 1 }
 0xfec   :  { %2924 = vsyncpa [#allocation5 + $0x1], 1 }
 0xfed   :  { %2925 = vsyncpa [#allocation8], 1 }
 0xfee   :  { %2927 = vsyncpa [#allocation8 + $0x1], 1 }
 0xfef   :  { %2928 = vsyncpa [#allocation11], 1 }
 0xff0   :  { %2930 = vsyncpa [#allocation11 + $0x1], 1 }
 0xff1   :  { %2931 = vsyncpa [#allocation14], 1 }
 0xff2   :  { %2933 = vsyncpa [#allocation14 + $0x1], 1 }
 0xff3   :  { %2934 = vsyncpa [#allocation17], 1 }
 0xff4   :  { %2936 = vsyncpa [#allocation17 + $0x1], 1 }
 0xff5   :  { %2937 = vsyncpa [#allocation20], 1 }
 0xff6   :  { %2938 = vsyncpa [#allocation6], 1 }
 0xff7   :  { %2940 = vsyncpa [#allocation6 + $0x1], 1 }

</bundles_post_ra>
